<compile_context>
chip_gen: v6e
topology: v6e:2x2x1
jax: 0.10.0
libtpu: 0.0.40
codegen_flags: <defaults>
</compile_context>

<pallas_src>
import functools
import math

import jax
import jax.numpy as jnp
from jax.experimental import pallas as pl
from jax.experimental.pallas import tpu as pltpu


_LANE = 128  # lane width / N padding target


# ------------------------------- helpers ------------------------------------

def _round_up(x, m):
    return ((x + m - 1) // m) * m


def _choose_tile_m(m):
    """M tile: multiple of 16 (safe for bf16 sublane tiling), capped at 512."""
    m16 = _round_up(m, 16)
    return m16 if m16 <= 512 else 512


def _pad2d(a, rows, cols):
    r, c = a.shape
    return jnp.pad(a, ((0, rows - r), (0, cols - c)))


# ----------------------------- Pallas kernels -------------------------------

def _conv_relu_pool_kernel(p00_ref, p01_ref, p10_ref, p11_ref, w_ref, o_ref):
    """Fused Conv(im2col matmul) + ReLU + 2x2 MaxPool.

    Each p*_ref holds the im2col patches of one corner of the 2x2 pooling window
    (same pooled output positions, shifted conv positions).  Four MXU matmuls,
    ReLU on the f32 accumulator, elementwise max across the four corners.
    """
    w = w_ref[...]

    def branch(p_ref):
        acc = jnp.dot(p_ref[...], w, preferred_element_type=jnp.float32)
        return jnp.maximum(acc, 0.0)

    pooled = jnp.maximum(jnp.maximum(branch(p00_ref), branch(p01_ref)),
                         jnp.maximum(branch(p10_ref), branch(p11_ref)))
    o_ref[...] = pooled.astype(o_ref.dtype)


def _fc_head_kernel(x_ref, w1_ref, w2_ref, w3_ref, o_ref):
    """Fused FC head: (x @ W1) relu (@ W2) relu (@ W3); weights resident in VMEM."""
    h = jnp.dot(x_ref[...], w1_ref[...], preferred_element_type=jnp.float32)
    h = jnp.maximum(h, 0.0).astype(jnp.bfloat16)
    h = jnp.dot(h, w2_ref[...], preferred_element_type=jnp.float32)
    h = jnp.maximum(h, 0.0).astype(jnp.bfloat16)
    o_ref[...] = jnp.dot(h, w3_ref[...], preferred_element_type=jnp.float32)


# --------------------------- pallas_call wrappers ----------------------------

def conv_relu_pool(corners, w_pad):
    """corners: 4 arrays (M, K); w_pad: (Kp, 128) bf16 -> pooled (M, 128) bf16."""
    M, K = corners[0].shape
    Kp, Np = w_pad.shape
    tile_m = _choose_tile_m(M)
    Mp = _round_up(M, tile_m)

    def prep(p):
        return _pad2d(p, Mp, Kp).astype(jnp.bfloat16)

    inputs = [prep(p) for p in corners]

    x_spec = pl.BlockSpec((tile_m, Kp), lambda i: (i, 0))
    w_spec = pl.BlockSpec((Kp, Np), lambda i: (0, 0))     # resident across M tiles
    o_spec = pl.BlockSpec((tile_m, Np), lambda i: (i, 0))

    out = pl.pallas_call(
        _conv_relu_pool_kernel,
        out_shape=jax.ShapeDtypeStruct((Mp, Np), jnp.bfloat16),
        grid=(Mp // tile_m,),
        in_specs=[x_spec, x_spec, x_spec, x_spec, w_spec],
        out_specs=o_spec,
        compiler_params=pltpu.CompilerParams(
            dimension_semantics=("parallel",)),
    )(*inputs, w_pad)
    return out[:M]


def fc_head(feats, w1p, w2p, w3p, num_classes):
    """feats: (B, 400) -> logits (B, num_classes). Three FCs fused in one call."""
    B, K = feats.shape
    Kp = w1p.shape[0]
    Np = w3p.shape[1]
    tile_m = _choose_tile_m(B)
    Bp = _round_up(B, tile_m)

    x = _pad2d(feats, Bp, Kp).astype(jnp.bfloat16)

    out = pl.pallas_call(
        _fc_head_kernel,
        out_shape=jax.ShapeDtypeStruct((Bp, Np), jnp.float32),
        grid=(Bp // tile_m,),
        in_specs=[pl.BlockSpec((tile_m, Kp), lambda i: (i, 0)),
                  pl.BlockSpec(w1p.shape, lambda i: (0, 0)),
                  pl.BlockSpec(w2p.shape, lambda i: (0, 0)),
                  pl.BlockSpec(w3p.shape, lambda i: (0, 0))],
        out_specs=pl.BlockSpec((tile_m, Np), lambda i: (i, 0)),
        compiler_params=pltpu.CompilerParams(
            dimension_semantics=("parallel",)),
    )(x, w1p, w2p, w3p)
    return out[:B, :num_classes]


# --------------------------- conv patch glue (JAX) ---------------------------

def _pooled_patches(x_nhwc, ksize, pool=2):
    """im2col patches grouped by 2x2-pool corner.

    x: (B, H, W, C).  Returns ([p00, p01, p10, p11], (PH, PW)) where each p is
    (B*PH*PW, KH*KW*C), rows ordered (b, ph, pw), K ordered (kh, kw, c).
    Floor pooling (matches MaxPool2d default) by construction.
    """
    B, H, W, C = x_nhwc.shape
    KH, KW = ksize
    OH, OW = H - KH + 1, W - KW + 1
    PH, PW = OH // pool, OW // pool

    corners = []
    for dy in range(pool):
        for dx in range(pool):
            slabs = []
            for kh in range(KH):
                for kw in range(KW):
                    s = x_nhwc[:, dy + kh::pool, dx + kw::pool, :]
                    slabs.append(s[:, :PH, :PW, :])          # (B, PH, PW, C)
            p = jnp.stack(slabs, axis=3)                     # (B, PH, PW, KH*KW, C)
            corners.append(p.reshape(B * PH * PW, KH * KW * C))
    return corners, (PH, PW)


# ------------------------------- parameters ----------------------------------

def init_params(key, num_of_classes=10):
    """Deterministic params mirroring CustomCNN(b_global=False), PyTorch layout,
    uniform(-1/sqrt(fan_in), 1/sqrt(fan_in))."""
    def u(k, shape, fan_in):
        bound = 1.0 / math.sqrt(fan_in)
        return jax.random.uniform(k, shape, jnp.float32, -bound, bound)

    ks = jax.random.split(key, 5)
    return {
        "conv1": u(ks[0], (6, 3, 5, 5), 3 * 5 * 5),
        "conv2": u(ks[1], (16, 6, 5, 5), 6 * 5 * 5),
        "fc1":   u(ks[2], (120, 16 * 5 * 5), 16 * 5 * 5),
        "fc2":   u(ks[3], (84, 120), 120),
        "fc3":   u(ks[4], (num_of_classes, 84), 84),
    }


def prepare_params(params):
    """One-time weight prep: reorder to (kh, kw, c)/(h, w, c) layouts, transpose
    for x @ W, zero-pad K to multiples of 128 and N to 128, cast to bf16."""
    prepped = {}
    # conv weights: (O, C, KH, KW) -> (KH*KW*C, O), padded
    for name in ("conv1", "conv2"):
        w = params[name]
        O, C, KH, KW = w.shape
        wt = jnp.transpose(w, (2, 3, 1, 0)).reshape(KH * KW * C, O)
        prepped[name] = _pad2d(
            wt, _round_up(KH * KW * C, _LANE), _LANE).astype(jnp.bfloat16)

    # fc1: torch flatten order is (c, h, w); our activations are flattened (h, w, c)
    w1 = params["fc1"]                                  # (120, 400)
    w1 = w1.reshape(120, 16, 5, 5)                      # (o, c, h, w)
    w1 = jnp.transpose(w1, (0, 2, 3, 1)).reshape(120, 400).T   # (400, 120), (h,w,c) rows
    prepped["fc1"] = _pad2d(w1, _round_up(400, _LANE), _LANE).astype(jnp.bfloat16)

    prepped["fc2"] = _pad2d(params["fc2"].T, _LANE, _LANE).astype(jnp.bfloat16)
    prepped["fc3"] = _pad2d(params["fc3"].T, _LANE, _LANE).astype(jnp.bfloat16)
    return prepped


# ------------------------------ model forward --------------------------------

def custom_cnn_forward(prepped, x_nchw, num_classes):
    """x: (B, 3, 32, 32) f32 NCHW -> logits (B, num_classes)."""
    B, C, H, W = x_nchw.shape
    assert (C, H, W) == (3, 32, 32), "CustomCNN expects 3x32x32 inputs"

    x = jnp.transpose(x_nchw, (0, 2, 3, 1))             # channels-last (B, 32, 32, 3)

    # Conv1(3->6, 5x5) + ReLU + MaxPool2x2, fused in one pallas_call
    corners, (ph, pw) = _pooled_patches(x, (5, 5))
    y = conv_relu_pool(corners, prepped["conv1"])        # (B*14*14, 128) bf16
    y = y[:, :6].reshape(B, ph, pw, 6)                   # (B, 14, 14, 6)

    # Conv2(6->16, 5x5) + ReLU + MaxPool2x2, fused
    corners, (ph, pw) = _pooled_patches(y, (5, 5))
    y = conv_relu_pool(corners, prepped["conv2"])        # (B*5*5, 128) bf16
    feats = y[:, :16].reshape(B, ph * pw * 16)           # (B, 400), (h, w, c) order

    # FC head 400 -> 120 -> 84 -> num_classes, fused (fc1 pre-permuted to match layout)
    return fc_head(feats, prepped["fc1"], prepped["fc2"], prepped["fc3"], num_classes)


# ----------------------------------- main -------------------------------------

if __name__ == "__main__":
    key = jax.random.PRNGKey(0)
    k_params, k_x = jax.random.split(key)

    num_classes = 10
    raw_params = init_params(k_params, num_of_classes=num_classes)
    prepped = prepare_params(raw_params)

    # Spatial size must be 32x32 so the flattened feature dim is 16*5*5 = 400.
    B = 2
    x = jax.random.normal(k_x, (B, 3, 32, 32), dtype=jnp.float32)

    fwd = jax.jit(lambda p, xx: custom_cnn_forward(p, xx, num_classes))
    logits = jax.block_until_ready(fwd(prepped, x))

    assert logits.shape == (B, num_classes), logits.shape
    assert bool(jnp.all(jnp.isfinite(logits)))

    print("KERNEL_OK")
</pallas_src>

<mosaic_0001>
module attributes {stable_mosaic.version = 11 : i64} {
  func.func @_conv_relu_pool_kernel(%arg0: i32, %arg1: memref<400x128xbf16, #tpu.memory_space<vmem>>, %arg2: memref<400x128xbf16, #tpu.memory_space<vmem>>, %arg3: memref<400x128xbf16, #tpu.memory_space<vmem>>, %arg4: memref<400x128xbf16, #tpu.memory_space<vmem>>, %arg5: memref<128x128xbf16, #tpu.memory_space<vmem>>, %arg6: memref<400x128xbf16, #tpu.memory_space<vmem>>) attributes {dimension_semantics = [#tpu.dimension_semantics<parallel>], iteration_bounds = array<i64: 1>, scalar_prefetch = 0 : i64, scratch_operands = 0 : i64, tpu.core_type = #tpu.core_type<tc>, window_params = [{transform_indices = @transform_0, window_bounds = array<i64: 400, 128>}, {transform_indices = @transform_1, window_bounds = array<i64: 400, 128>}, {transform_indices = @transform_2, window_bounds = array<i64: 400, 128>}, {transform_indices = @transform_3, window_bounds = array<i64: 400, 128>}, {pipeline_mode = #tpu.pipeline_mode<synchronous>, transform_indices = @transform_4, window_bounds = array<i64: 128, 128>}, {transform_indices = @transform_5, window_bounds = array<i64: 400, 128>}]} {
    %c0 = arith.constant 0 : index
    %c0_0 = arith.constant 0 : index
    %0 = vector.load %arg5[%c0, %c0_0] : memref<128x128xbf16, #tpu.memory_space<vmem>>, vector<128x128xbf16>
    %c0_1 = arith.constant 0 : index
    %c0_2 = arith.constant 0 : index
    %1 = vector.load %arg1[%c0_1, %c0_2] : memref<400x128xbf16, #tpu.memory_space<vmem>>, vector<400x128xbf16>
    %cst = arith.constant dense<0.000000e+00> : vector<400x128xf32>
    %2 = tpu.matmul %1, %0, %cst {dimension_numbers = #tpu.dot_dimension_numbers<[1], [0], [0], [1], [0, 0, 1, 1], [], []>} : vector<400x128xbf16>, vector<128x128xbf16>, vector<400x128xf32> -> vector<400x128xf32>
    %cst_3 = arith.constant 0.000000e+00 : f32
    %3 = vector.broadcast %cst_3 : f32 to vector<400x128xf32>
    %4 = arith.maximumf %2, %3 : vector<400x128xf32>
    %c0_4 = arith.constant 0 : index
    %c0_5 = arith.constant 0 : index
    %5 = vector.load %arg2[%c0_4, %c0_5] : memref<400x128xbf16, #tpu.memory_space<vmem>>, vector<400x128xbf16>
    %cst_6 = arith.constant dense<0.000000e+00> : vector<400x128xf32>
    %6 = tpu.matmul %5, %0, %cst_6 {dimension_numbers = #tpu.dot_dimension_numbers<[1], [0], [0], [1], [0, 0, 1, 1], [], []>} : vector<400x128xbf16>, vector<128x128xbf16>, vector<400x128xf32> -> vector<400x128xf32>
    %cst_7 = arith.constant 0.000000e+00 : f32
    %7 = vector.broadcast %cst_7 : f32 to vector<400x128xf32>
    %8 = arith.maximumf %6, %7 : vector<400x128xf32>
    %9 = arith.maximumf %4, %8 : vector<400x128xf32>
    %c0_8 = arith.constant 0 : index
    %c0_9 = arith.constant 0 : index
    %10 = vector.load %arg3[%c0_8, %c0_9] : memref<400x128xbf16, #tpu.memory_space<vmem>>, vector<400x128xbf16>
    %cst_10 = arith.constant dense<0.000000e+00> : vector<400x128xf32>
    %11 = tpu.matmul %10, %0, %cst_10 {dimension_numbers = #tpu.dot_dimension_numbers<[1], [0], [0], [1], [0, 0, 1, 1], [], []>} : vector<400x128xbf16>, vector<128x128xbf16>, vector<400x128xf32> -> vector<400x128xf32>
    %cst_11 = arith.constant 0.000000e+00 : f32
    %12 = vector.broadcast %cst_11 : f32 to vector<400x128xf32>
    %13 = arith.maximumf %11, %12 : vector<400x128xf32>
    %c0_12 = arith.constant 0 : index
    %c0_13 = arith.constant 0 : index
    %14 = vector.load %arg4[%c0_12, %c0_13] : memref<400x128xbf16, #tpu.memory_space<vmem>>, vector<400x128xbf16>
    %cst_14 = arith.constant dense<0.000000e+00> : vector<400x128xf32>
    %15 = tpu.matmul %14, %0, %cst_14 {dimension_numbers = #tpu.dot_dimension_numbers<[1], [0], [0], [1], [0, 0, 1, 1], [], []>} : vector<400x128xbf16>, vector<128x128xbf16>, vector<400x128xf32> -> vector<400x128xf32>
    %cst_15 = arith.constant 0.000000e+00 : f32
    %16 = vector.broadcast %cst_15 : f32 to vector<400x128xf32>
    %17 = arith.maximumf %15, %16 : vector<400x128xf32>
    %18 = arith.maximumf %13, %17 : vector<400x128xf32>
    %19 = arith.maximumf %9, %18 : vector<400x128xf32>
    %20 = arith.truncf %19 : vector<400x128xf32> to vector<400x128xbf16>
    %c0_16 = arith.constant 0 : index
    %c0_17 = arith.constant 0 : index
    %21 = vector.load %arg6[%c0_16, %c0_17] : memref<400x128xbf16, #tpu.memory_space<vmem>>, vector<400x128xbf16>
    tpu.vector_store %arg6[%c0_16, %c0_17], %20 {strides = array<i32>} : memref<400x128xbf16, #tpu.memory_space<vmem>>, vector<400x128xbf16>,
    return
  }
  func.func @transform_0(%arg0: i32) -> (i32, i32) {
    %c0_i32 = arith.constant 0 : i32
    %c0_i32_0 = arith.constant 0 : i32
    return %arg0, %c0_i32 : i32, i32
  }
  func.func @transform_1(%arg0: i32) -> (i32, i32) {
    %c0_i32 = arith.constant 0 : i32
    %c0_i32_0 = arith.constant 0 : i32
    return %arg0, %c0_i32 : i32, i32
  }
  func.func @transform_2(%arg0: i32) -> (i32, i32) {
    %c0_i32 = arith.constant 0 : i32
    %c0_i32_0 = arith.constant 0 : i32
    return %arg0, %c0_i32 : i32, i32
  }
  func.func @transform_3(%arg0: i32) -> (i32, i32) {
    %c0_i32 = arith.constant 0 : i32
    %c0_i32_0 = arith.constant 0 : i32
    return %arg0, %c0_i32 : i32, i32
  }
  func.func @transform_4(%arg0: i32) -> (i32, i32) {
    %c0_i32 = arith.constant 0 : i32
    %c0_i32_0 = arith.constant 0 : i32
    %c0_i32_1 = arith.constant 0 : i32
    return %c0_i32, %c0_i32_0 : i32, i32
  }
  func.func @transform_5(%arg0: i32) -> (i32, i32) {
    %c0_i32 = arith.constant 0 : i32
    %c0_i32_0 = arith.constant 0 : i32
    return %arg0, %c0_i32 : i32, i32
  }
}

module attributes {stable_mosaic.version = 11 : i64} {
  func.func @_conv_relu_pool_kernel(%arg0: i32, %arg1: memref<64x256xbf16, #tpu.memory_space<vmem>>, %arg2: memref<64x256xbf16, #tpu.memory_space<vmem>>, %arg3: memref<64x256xbf16, #tpu.memory_space<vmem>>, %arg4: memref<64x256xbf16, #tpu.memory_space<vmem>>, %arg5: memref<256x128xbf16, #tpu.memory_space<vmem>>, %arg6: memref<64x128xbf16, #tpu.memory_space<vmem>>) attributes {dimension_semantics = [#tpu.dimension_semantics<parallel>], iteration_bounds = array<i64: 1>, scalar_prefetch = 0 : i64, scratch_operands = 0 : i64, tpu.core_type = #tpu.core_type<tc>, window_params = [{transform_indices = @transform_0, window_bounds = array<i64: 64, 256>}, {transform_indices = @transform_1, window_bounds = array<i64: 64, 256>}, {transform_indices = @transform_2, window_bounds = array<i64: 64, 256>}, {transform_indices = @transform_3, window_bounds = array<i64: 64, 256>}, {pipeline_mode = #tpu.pipeline_mode<synchronous>, transform_indices = @transform_4, window_bounds = array<i64: 256, 128>}, {transform_indices = @transform_5, window_bounds = array<i64: 64, 128>}]} {
    %c0 = arith.constant 0 : index
    %c0_0 = arith.constant 0 : index
    %0 = vector.load %arg5[%c0, %c0_0] : memref<256x128xbf16, #tpu.memory_space<vmem>>, vector<256x128xbf16>
    %c0_1 = arith.constant 0 : index
    %c0_2 = arith.constant 0 : index
    %1 = vector.load %arg1[%c0_1, %c0_2] : memref<64x256xbf16, #tpu.memory_space<vmem>>, vector<64x256xbf16>
    %cst = arith.constant dense<0.000000e+00> : vector<64x128xf32>
    %2 = tpu.matmul %1, %0, %cst {dimension_numbers = #tpu.dot_dimension_numbers<[1], [0], [0], [1], [0, 0, 1, 1], [], []>} : vector<64x256xbf16>, vector<256x128xbf16>, vector<64x128xf32> -> vector<64x128xf32>
    %cst_3 = arith.constant 0.000000e+00 : f32
    %3 = vector.broadcast %cst_3 : f32 to vector<64x128xf32>
    %4 = arith.maximumf %2, %3 : vector<64x128xf32>
    %c0_4 = arith.constant 0 : index
    %c0_5 = arith.constant 0 : index
    %5 = vector.load %arg2[%c0_4, %c0_5] : memref<64x256xbf16, #tpu.memory_space<vmem>>, vector<64x256xbf16>
    %cst_6 = arith.constant dense<0.000000e+00> : vector<64x128xf32>
    %6 = tpu.matmul %5, %0, %cst_6 {dimension_numbers = #tpu.dot_dimension_numbers<[1], [0], [0], [1], [0, 0, 1, 1], [], []>} : vector<64x256xbf16>, vector<256x128xbf16>, vector<64x128xf32> -> vector<64x128xf32>
    %cst_7 = arith.constant 0.000000e+00 : f32
    %7 = vector.broadcast %cst_7 : f32 to vector<64x128xf32>
    %8 = arith.maximumf %6, %7 : vector<64x128xf32>
    %9 = arith.maximumf %4, %8 : vector<64x128xf32>
    %c0_8 = arith.constant 0 : index
    %c0_9 = arith.constant 0 : index
    %10 = vector.load %arg3[%c0_8, %c0_9] : memref<64x256xbf16, #tpu.memory_space<vmem>>, vector<64x256xbf16>
    %cst_10 = arith.constant dense<0.000000e+00> : vector<64x128xf32>
    %11 = tpu.matmul %10, %0, %cst_10 {dimension_numbers = #tpu.dot_dimension_numbers<[1], [0], [0], [1], [0, 0, 1, 1], [], []>} : vector<64x256xbf16>, vector<256x128xbf16>, vector<64x128xf32> -> vector<64x128xf32>
    %cst_11 = arith.constant 0.000000e+00 : f32
    %12 = vector.broadcast %cst_11 : f32 to vector<64x128xf32>
    %13 = arith.maximumf %11, %12 : vector<64x128xf32>
    %c0_12 = arith.constant 0 : index
    %c0_13 = arith.constant 0 : index
    %14 = vector.load %arg4[%c0_12, %c0_13] : memref<64x256xbf16, #tpu.memory_space<vmem>>, vector<64x256xbf16>
    %cst_14 = arith.constant dense<0.000000e+00> : vector<64x128xf32>
    %15 = tpu.matmul %14, %0, %cst_14 {dimension_numbers = #tpu.dot_dimension_numbers<[1], [0], [0], [1], [0, 0, 1, 1], [], []>} : vector<64x256xbf16>, vector<256x128xbf16>, vector<64x128xf32> -> vector<64x128xf32>
    %cst_15 = arith.constant 0.000000e+00 : f32
    %16 = vector.broadcast %cst_15 : f32 to vector<64x128xf32>
    %17 = arith.maximumf %15, %16 : vector<64x128xf32>
    %18 = arith.maximumf %13, %17 : vector<64x128xf32>
    %19 = arith.maximumf %9, %18 : vector<64x128xf32>
    %20 = arith.truncf %19 : vector<64x128xf32> to vector<64x128xbf16>
    %c0_16 = arith.constant 0 : index
    %c0_17 = arith.constant 0 : index
    %21 = vector.load %arg6[%c0_16, %c0_17] : memref<64x128xbf16, #tpu.memory_space<vmem>>, vector<64x128xbf16>
    tpu.vector_store %arg6[%c0_16, %c0_17], %20 {strides = array<i32>} : memref<64x128xbf16, #tpu.memory_space<vmem>>, vector<64x128xbf16>,
    return
  }
  func.func @transform_0(%arg0: i32) -> (i32, i32) {
    %c0_i32 = arith.constant 0 : i32
    %c0_i32_0 = arith.constant 0 : i32
    return %arg0, %c0_i32 : i32, i32
  }
  func.func @transform_1(%arg0: i32) -> (i32, i32) {
    %c0_i32 = arith.constant 0 : i32
    %c0_i32_0 = arith.constant 0 : i32
    return %arg0, %c0_i32 : i32, i32
  }
  func.func @transform_2(%arg0: i32) -> (i32, i32) {
    %c0_i32 = arith.constant 0 : i32
    %c0_i32_0 = arith.constant 0 : i32
    return %arg0, %c0_i32 : i32, i32
  }
  func.func @transform_3(%arg0: i32) -> (i32, i32) {
    %c0_i32 = arith.constant 0 : i32
    %c0_i32_0 = arith.constant 0 : i32
    return %arg0, %c0_i32 : i32, i32
  }
  func.func @transform_4(%arg0: i32) -> (i32, i32) {
    %c0_i32 = arith.constant 0 : i32
    %c0_i32_0 = arith.constant 0 : i32
    %c0_i32_1 = arith.constant 0 : i32
    return %c0_i32, %c0_i32_0 : i32, i32
  }
  func.func @transform_5(%arg0: i32) -> (i32, i32) {
    %c0_i32 = arith.constant 0 : i32
    %c0_i32_0 = arith.constant 0 : i32
    return %arg0, %c0_i32 : i32, i32
  }
}

module attributes {stable_mosaic.version = 11 : i64} {
  func.func @_fc_head_kernel(%arg0: i32, %arg1: memref<16x512xbf16, #tpu.memory_space<vmem>>, %arg2: memref<512x128xbf16, #tpu.memory_space<vmem>>, %arg3: memref<128x128xbf16, #tpu.memory_space<vmem>>, %arg4: memref<128x128xbf16, #tpu.memory_space<vmem>>, %arg5: memref<16x128xf32, #tpu.memory_space<vmem>>) attributes {dimension_semantics = [#tpu.dimension_semantics<parallel>], iteration_bounds = array<i64: 1>, scalar_prefetch = 0 : i64, scratch_operands = 0 : i64, tpu.core_type = #tpu.core_type<tc>, window_params = [{transform_indices = @transform_0, window_bounds = array<i64: 16, 512>}, {pipeline_mode = #tpu.pipeline_mode<synchronous>, transform_indices = @transform_1, window_bounds = array<i64: 512, 128>}, {pipeline_mode = #tpu.pipeline_mode<synchronous>, transform_indices = @transform_2, window_bounds = array<i64: 128, 128>}, {pipeline_mode = #tpu.pipeline_mode<synchronous>, transform_indices = @transform_3, window_bounds = array<i64: 128, 128>}, {transform_indices = @transform_4, window_bounds = array<i64: 16, 128>}]} {
    %c0 = arith.constant 0 : index
    %c0_0 = arith.constant 0 : index
    %0 = vector.load %arg1[%c0, %c0_0] : memref<16x512xbf16, #tpu.memory_space<vmem>>, vector<16x512xbf16>
    %c0_1 = arith.constant 0 : index
    %c0_2 = arith.constant 0 : index
    %1 = vector.load %arg2[%c0_1, %c0_2] : memref<512x128xbf16, #tpu.memory_space<vmem>>, vector<512x128xbf16>
    %cst = arith.constant dense<0.000000e+00> : vector<16x128xf32>
    %2 = tpu.matmul %0, %1, %cst {dimension_numbers = #tpu.dot_dimension_numbers<[1], [0], [0], [1], [0, 0, 1, 1], [], []>} : vector<16x512xbf16>, vector<512x128xbf16>, vector<16x128xf32> -> vector<16x128xf32>
    %cst_3 = arith.constant 0.000000e+00 : f32
    %3 = vector.broadcast %cst_3 : f32 to vector<16x128xf32>
    %4 = arith.maximumf %2, %3 : vector<16x128xf32>
    %5 = arith.truncf %4 : vector<16x128xf32> to vector<16x128xbf16>
    %c0_4 = arith.constant 0 : index
    %c0_5 = arith.constant 0 : index
    %6 = vector.load %arg3[%c0_4, %c0_5] : memref<128x128xbf16, #tpu.memory_space<vmem>>, vector<128x128xbf16>
    %cst_6 = arith.constant dense<0.000000e+00> : vector<16x128xf32>
    %7 = tpu.matmul %5, %6, %cst_6 {dimension_numbers = #tpu.dot_dimension_numbers<[1], [0], [0], [1], [0, 0, 1, 1], [], []>} : vector<16x128xbf16>, vector<128x128xbf16>, vector<16x128xf32> -> vector<16x128xf32>
    %cst_7 = arith.constant 0.000000e+00 : f32
    %8 = vector.broadcast %cst_7 : f32 to vector<16x128xf32>
    %9 = arith.maximumf %7, %8 : vector<16x128xf32>
    %10 = arith.truncf %9 : vector<16x128xf32> to vector<16x128xbf16>
    %c0_8 = arith.constant 0 : index
    %c0_9 = arith.constant 0 : index
    %11 = vector.load %arg4[%c0_8, %c0_9] : memref<128x128xbf16, #tpu.memory_space<vmem>>, vector<128x128xbf16>
    %cst_10 = arith.constant dense<0.000000e+00> : vector<16x128xf32>
    %12 = tpu.matmul %10, %11, %cst_10 {dimension_numbers = #tpu.dot_dimension_numbers<[1], [0], [0], [1], [0, 0, 1, 1], [], []>} : vector<16x128xbf16>, vector<128x128xbf16>, vector<16x128xf32> -> vector<16x128xf32>
    %c0_11 = arith.constant 0 : index
    %c0_12 = arith.constant 0 : index
    %13 = vector.load %arg5[%c0_11, %c0_12] : memref<16x128xf32, #tpu.memory_space<vmem>>, vector<16x128xf32>
    tpu.vector_store %arg5[%c0_11, %c0_12], %12 {strides = array<i32>} : memref<16x128xf32, #tpu.memory_space<vmem>>, vector<16x128xf32>,
    return
  }
  func.func @transform_0(%arg0: i32) -> (i32, i32) {
    %c0_i32 = arith.constant 0 : i32
    %c0_i32_0 = arith.constant 0 : i32
    return %arg0, %c0_i32 : i32, i32
  }
  func.func @transform_1(%arg0: i32) -> (i32, i32) {
    %c0_i32 = arith.constant 0 : i32
    %c0_i32_0 = arith.constant 0 : i32
    %c0_i32_1 = arith.constant 0 : i32
    return %c0_i32, %c0_i32_0 : i32, i32
  }
  func.func @transform_2(%arg0: i32) -> (i32, i32) {
    %c0_i32 = arith.constant 0 : i32
    %c0_i32_0 = arith.constant 0 : i32
    %c0_i32_1 = arith.constant 0 : i32
    return %c0_i32, %c0_i32_0 : i32, i32
  }
  func.func @transform_3(%arg0: i32) -> (i32, i32) {
    %c0_i32 = arith.constant 0 : i32
    %c0_i32_0 = arith.constant 0 : i32
    %c0_i32_1 = arith.constant 0 : i32
    return %c0_i32, %c0_i32_0 : i32, i32
  }
  func.func @transform_4(%arg0: i32) -> (i32, i32) {
    %c0_i32 = arith.constant 0 : i32
    %c0_i32_0 = arith.constant 0 : i32
    return %arg0, %c0_i32 : i32, i32
  }
}

</mosaic_0001>

<bundles_post_ra>
// kernel: _lambda_.3
= control target key start
LH: loop header
LB: loop body
LE: loop exit
PB: predicated region body
PF: predicated region fallthrough
CT: control target
= control target key end

     0   :  { %v3484_v0 = vmov 0.0   ;;  %vm3485_vm0 = vmmov 0   ;;  %s4297_s4 = inlined_call_operand.vmem [shape: bf16[128,128], index: 4, kind: input, shape index: {}]   ;;  %s4298_s0 = inlined_call_operand.vmem [shape: bf16[400,128], index: 0, kind: input, shape index: {}]   ;;  %s4299_s1 = inlined_call_operand.vmem [shape: bf16[400,128], index: 1, kind: input, shape index: {}]   ;;  %s4300_s2 = inlined_call_operand.vmem [shape: bf16[400,128], index: 2, kind: input, shape index: {}]   ;;  %s4301_s3 = inlined_call_operand.vmem [shape: bf16[400,128], index: 3, kind: input, shape index: {}]   ;;  %s4302_s5 = inlined_call_operand.vmem [shape: bf16[400,128], index: 5, kind: output, shape index: {}]  }
   0x1   :  { %2910 = vmatprep.subr.bf16.mxu0 %v3484_v0  ;;  %3026 = vmatprep.subr.bf16.mxu1 %v3484_v0  ;;  %v3376_v1 = vld [vmem:[%s4297_s4 + $0x38] sm:$0xff]   ;;  %v3377_v2 = vld [vmem:[%s4297_s4 + $0x30] sm:$0xff]   ;;  %v3378_v3 = vld [vmem:[%s4297_s4 + $0x28] sm:$0xff]  }
   0x2   :  { %2926 = vmatprep.mubr.msk.bf16.mxu0 %vm3485_vm0, %v3484_v0  ;;  %3042 = vmatprep.mubr.msk.bf16.mxu1 %vm3485_vm0, %v3484_v0  ;;  %v3379_v4 = vld [vmem:[%s4297_s4 + $0x20] sm:$0xff]   ;;  %v3380_v5 = vld [vmem:[%s4297_s4 + $0x18] sm:$0xff]   ;;  %v3381_v6 = vld [vmem:[%s4297_s4 + $0x10] sm:$0xff]  }
   0x3   :  { %2911 = vmatpush3.bf16.msra.mxu0 %v3376_v1  ;;  %3027 = vmatpush3.bf16.msra.mxu1 %v3376_v1  ;;  %v3382_v7 = vld [vmem:[%s4297_s4 + $0x8] sm:$0xff]   ;;  %v3383_v8 = vld [vmem:[%s4297_s4] sm:$0xff]   ;;  %v3388_v13 = vld [vmem:[%s4298_s0 + $0x10] sm:$0xff]  }
   0x4   :  { %2912 = vmatprep.subr.bf16.mxu0 %v3484_v0  ;;  %3028 = vmatprep.subr.bf16.mxu1 %v3484_v0  ;;  %v3384_v9 = vld [vmem:[%s4298_s0] sm:$0xff]   ;;  %v3386_v11 = vld [vmem:[%s4298_s0 + $0x8] sm:$0xff]   ;;  %v3389_v14 = vld [vmem:[%s4299_s1 + $0x10] sm:$0xff]  }
   0x5   :  { %v3385_v10 = vld [vmem:[%s4299_s1] sm:$0xff]   ;;  %v3387_v12 = vld [vmem:[%s4299_s1 + $0x8] sm:$0xff]   ;;  %v3390_v15 = vld [vmem:[%s4298_s0 + $0x18] sm:$0xff]  }
   0x6   :  { %v3391_v16 = vld [vmem:[%s4299_s1 + $0x18] sm:$0xff]   ;;  %v3392_v17 = vld [vmem:[%s4298_s0 + $0x20] sm:$0xff]   ;;  %v3394_v19 = vld [vmem:[%s4298_s0 + $0x28] sm:$0xff]  }
   0x7   :  { %2913 = vmatpush3.bf16.msra.mxu0 %v3377_v2  ;;  %3029 = vmatpush3.bf16.msra.mxu1 %v3377_v2  ;;  %v3393_v18 = vld [vmem:[%s4299_s1 + $0x20] sm:$0xff]   ;;  %v3395_v20 = vld [vmem:[%s4299_s1 + $0x28] sm:$0xff]   ;;  %v3396_v21 = vld [vmem:[%s4298_s0 + $0x30] sm:$0xff]  }
   0x8   :  { %2914 = vmatprep.subr.bf16.mxu0 %v3484_v0  ;;  %3030 = vmatprep.subr.bf16.mxu1 %v3484_v0  ;;  %v3397_v22 = vld [vmem:[%s4299_s1 + $0x30] sm:$0xff]   ;;  %v3398_v23 = vld [vmem:[%s4298_s0 + $0x38] sm:$0xff]   ;;  %v3400_v25 = vld [vmem:[%s4298_s0 + $0x40] sm:$0xff]  }
   0x9   :  { %v3399_v24 = vld [vmem:[%s4299_s1 + $0x38] sm:$0xff]   ;;  %v3401_v26 = vld [vmem:[%s4299_s1 + $0x40] sm:$0xff]   ;;  %v3402_v27 = vld [vmem:[%s4298_s0 + $0x48] sm:$0xff]  }
   0xa   :  { %v3403_v28 = vld [vmem:[%s4299_s1 + $0x48] sm:$0xff]   ;;  %v3404_v29 = vld [vmem:[%s4298_s0 + $0x50] sm:$0xff]   ;;  %v3406_v31 = vld [vmem:[%s4298_s0 + $0x58] sm:$0xff]  }
   0xb   :  { %2915 = vmatpush3.bf16.msra.mxu0 %v3378_v3  ;;  %3031 = vmatpush3.bf16.msra.mxu1 %v3378_v3  ;;  %v3405_v30 = vld [vmem:[%s4299_s1 + $0x50] sm:$0xff]   ;;  %v3407_v32 = vld [vmem:[%s4299_s1 + $0x58] sm:$0xff]   ;;  %v3408_v33 = vld [vmem:[%s4298_s0 + $0x60] sm:$0xff]  }
   0xc   :  { %2916 = vmatprep.subr.bf16.mxu0 %v3484_v0  ;;  %3032 = vmatprep.subr.bf16.mxu1 %v3484_v0  ;;  %v3409_v34 = vld [vmem:[%s4299_s1 + $0x60] sm:$0xff]   ;;  %v3410_v35 = vld [vmem:[%s4298_s0 + $0x68] sm:$0xff]   ;;  %v3412_v37 = vld [vmem:[%s4298_s0 + $0x70] sm:$0xff]  }
   0xd   :  { %v3411_v36 = vld [vmem:[%s4299_s1 + $0x68] sm:$0xff]   ;;  %v3413_v38 = vld [vmem:[%s4299_s1 + $0x70] sm:$0xff]   ;;  %v3414_v39 = vld [vmem:[%s4298_s0 + $0x78] sm:$0xff]  }
   0xe   :  { %v3415_v40 = vld [vmem:[%s4299_s1 + $0x78] sm:$0xff]   ;;  %v3416_v41 = vld [vmem:[%s4298_s0 + $0x80] sm:$0xff]   ;;  %v3418_v43 = vld [vmem:[%s4298_s0 + $0x88] sm:$0xff]  }
   0xf   :  { %2917 = vmatpush3.bf16.msra.mxu0 %v3379_v4  ;;  %3033 = vmatpush3.bf16.msra.mxu1 %v3379_v4  ;;  %v3417_v42 = vld [vmem:[%s4299_s1 + $0x80] sm:$0xff]   ;;  %v3419_v44 = vld [vmem:[%s4299_s1 + $0x88] sm:$0xff]   ;;  %v3420_v45 = vld [vmem:[%s4298_s0 + $0x90] sm:$0xff]  }
  0x10   :  { %2918 = vmatprep.subr.bf16.mxu0 %v3484_v0  ;;  %3034 = vmatprep.subr.bf16.mxu1 %v3484_v0  ;;  %v3421_v46 = vld [vmem:[%s4299_s1 + $0x90] sm:$0xff]   ;;  %v3422_v47 = vld [vmem:[%s4298_s0 + $0x98] sm:$0xff]   ;;  %v3424_v49 = vld [vmem:[%s4298_s0 + $0xa0] sm:$0xff]  }
  0x11   :  { %v3423_v48 = vld [vmem:[%s4299_s1 + $0x98] sm:$0xff]   ;;  %v3425_v50 = vld [vmem:[%s4299_s1 + $0xa0] sm:$0xff]   ;;  %v3426_v51 = vld [vmem:[%s4298_s0 + $0xa8] sm:$0xff]  }
  0x12   :  { %v3427_v52 = vld [vmem:[%s4299_s1 + $0xa8] sm:$0xff]   ;;  %v3428_v53 = vld [vmem:[%s4298_s0 + $0xb0] sm:$0xff]   ;;  %v3430_v55 = vld [vmem:[%s4298_s0 + $0xb8] sm:$0xff]  }
  0x13   :  { %2919 = vmatpush3.bf16.msra.mxu0 %v3380_v5  ;;  %3035 = vmatpush3.bf16.msra.mxu1 %v3380_v5  ;;  %v3429_v54 = vld [vmem:[%s4299_s1 + $0xb0] sm:$0xff]   ;;  %v3431_v56 = vld [vmem:[%s4299_s1 + $0xb8] sm:$0xff]   ;;  %v3432_v57 = vld [vmem:[%s4298_s0 + $0xc0] sm:$0xff]  }
  0x14   :  { %2920 = vmatprep.subr.bf16.mxu0 %v3484_v0  ;;  %3036 = vmatprep.subr.bf16.mxu1 %v3484_v0  ;;  %v3433_v58 = vld [vmem:[%s4299_s1 + $0xc0] sm:$0xff]  }
  0x17   :  { %2921 = vmatpush3.bf16.msra.mxu0 %v3381_v6  ;;  %3037 = vmatpush3.bf16.msra.mxu1 %v3381_v6 }
  0x18   :  { %2922 = vmatprep.subr.bf16.mxu0 %v3484_v0  ;;  %3038 = vmatprep.subr.bf16.mxu1 %v3484_v0 }
  0x1b   :  { %2923 = vmatpush3.bf16.msra.mxu0 %v3382_v7  ;;  %3039 = vmatpush3.bf16.msra.mxu1 %v3382_v7 }
  0x1c   :  { %2924 = vmatprep.subr.bf16.mxu0 %v3484_v0  ;;  %3040 = vmatprep.subr.bf16.mxu1 %v3484_v0 }
  0x1f   :  { %2925 = vmatpush3.bf16.msra.mxu0 %v3383_v8  ;;  %3041 = vmatpush3.bf16.msra.mxu1 %v3383_v8 }
  0x20   :  { %3142 = vmatprep.subr.bf16.mxu0 %v3484_v0  ;;  %3258 = vmatprep.subr.bf16.mxu1 %v3484_v0 }
  0x22   :  { %2927 = vmatmul.mubr.bf16.vlgmr.msra.gmra.mxu0 %v3384_v9  ;;  %3043 = vmatmul.mubr.bf16.vlgmr.msra.gmra.mxu1 %v3385_v10 }
  0x23   :  { %3143 = vmatpush3.bf16.msra.mxu0 %v3376_v1  ;;  %3259 = vmatpush3.bf16.msra.mxu1 %v3376_v1 }
  0x24   :  { %2930 = vmatprep.mubr.msk.bf16.mxu0 %vm3485_vm0, %v3484_v0  ;;  %3046 = vmatprep.mubr.msk.bf16.mxu1 %vm3485_vm0, %v3484_v0 }
  0x25   :  { %3144 = vmatprep.subr.bf16.mxu0 %v3484_v0  ;;  %3260 = vmatprep.subr.bf16.mxu1 %v3484_v0 }
  0x27   :  { %3145 = vmatpush3.bf16.msra.mxu0 %v3377_v2  ;;  %3261 = vmatpush3.bf16.msra.mxu1 %v3377_v2 }
  0x28   :  { %3146 = vmatprep.subr.bf16.mxu0 %v3484_v0  ;;  %3262 = vmatprep.subr.bf16.mxu1 %v3484_v0 }
  0x2a   :  { %2931 = vmatmul.mubr.bf16.gmra.mxu0 %v3386_v11  ;;  %3047 = vmatmul.mubr.bf16.gmra.mxu1 %v3387_v12 }
  0x2b   :  { %2934 = vmatprep.mubr.msk.bf16.mxu0 %vm3485_vm0, %v3484_v0  ;;  %3050 = vmatprep.mubr.msk.bf16.mxu1 %vm3485_vm0, %v3484_v0 }
  0x2c   :  { %3147 = vmatpush3.bf16.msra.mxu0 %v3378_v3  ;;  %3263 = vmatpush3.bf16.msra.mxu1 %v3378_v3 }
  0x2d   :  { %3148 = vmatprep.subr.bf16.mxu0 %v3484_v0  ;;  %3264 = vmatprep.subr.bf16.mxu1 %v3484_v0 }
  0x30   :  { %3149 = vmatpush3.bf16.msra.mxu0 %v3379_v4  ;;  %3265 = vmatpush3.bf16.msra.mxu1 %v3379_v4 }
  0x31   :  { %3150 = vmatprep.subr.bf16.mxu0 %v3484_v0  ;;  %3266 = vmatprep.subr.bf16.mxu1 %v3484_v0 }
  0x32   :  { %2935 = vmatmul.mubr.bf16.gmra.mxu0 %v3388_v13  ;;  %3051 = vmatmul.mubr.bf16.gmra.mxu1 %v3389_v14 }
  0x33   :  { %2938 = vmatprep.mubr.msk.bf16.mxu0 %vm3485_vm0, %v3484_v0  ;;  %3054 = vmatprep.mubr.msk.bf16.mxu1 %vm3485_vm0, %v3484_v0 }
  0x34   :  { %3151 = vmatpush3.bf16.msra.mxu0 %v3380_v5  ;;  %3267 = vmatpush3.bf16.msra.mxu1 %v3380_v5  ;;  %v3434_v5 = vld [vmem:[%s4300_s2] sm:$0xff]  }
  0x35   :  { %3152 = vmatprep.subr.bf16.mxu0 %v3484_v0  ;;  %3268 = vmatprep.subr.bf16.mxu1 %v3484_v0 }
  0x38   :  { %3153 = vmatpush3.bf16.msra.mxu0 %v3381_v6  ;;  %3269 = vmatpush3.bf16.msra.mxu1 %v3381_v6  ;;  %v3435_v6 = vld [vmem:[%s4301_s3] sm:$0xff]  }
  0x39   :  { %3154 = vmatprep.subr.bf16.mxu0 %v3484_v0  ;;  %3270 = vmatprep.subr.bf16.mxu1 %v3484_v0 }
  0x3a   :  { %2939 = vmatmul.mubr.bf16.gmra.mxu0 %v3390_v15  ;;  %3055 = vmatmul.mubr.bf16.gmra.mxu1 %v3391_v16 }
  0x3b   :  { %2942 = vmatprep.mubr.msk.bf16.mxu0 %vm3485_vm0, %v3484_v0  ;;  %3058 = vmatprep.mubr.msk.bf16.mxu1 %vm3485_vm0, %v3484_v0 }
  0x3c   :  { %3155 = vmatpush3.bf16.msra.mxu0 %v3382_v7  ;;  %3271 = vmatpush3.bf16.msra.mxu1 %v3382_v7 }
  0x3d   :  { %3156 = vmatprep.subr.bf16.mxu0 %v3484_v0  ;;  %3272 = vmatprep.subr.bf16.mxu1 %v3484_v0 }
  0x40   :  { %3157 = vmatpush3.bf16.msra.mxu0 %v3383_v8  ;;  %3273 = vmatpush3.bf16.msra.mxu1 %v3383_v8 }
  0x42   :  { %2943 = vmatmul.mubr.bf16.gmra.mxu0 %v3392_v17  ;;  %3059 = vmatmul.mubr.bf16.gmra.mxu1 %v3393_v18 }
  0x43   :  { %2946 = vmatprep.mubr.msk.bf16.mxu0 %vm3485_vm0, %v3484_v0  ;;  %3062 = vmatprep.mubr.msk.bf16.mxu1 %vm3485_vm0, %v3484_v0 }
  0x4a   :  { %2947 = vmatmul.mubr.bf16.gmra.mxu0 %v3394_v19  ;;  %3063 = vmatmul.mubr.bf16.gmra.mxu1 %v3395_v20 }
  0x4b   :  { %2950 = vmatprep.mubr.msk.bf16.mxu0 %vm3485_vm0, %v3484_v0  ;;  %3066 = vmatprep.mubr.msk.bf16.mxu1 %vm3485_vm0, %v3484_v0 }
  0x52   :  { %2951 = vmatmul.mubr.bf16.gmra.mxu0 %v3396_v21  ;;  %3067 = vmatmul.mubr.bf16.gmra.mxu1 %v3397_v22  ;;  %v3436_v21 = vld [vmem:[%s4300_s2 + $0x8] sm:$0xff]  }
  0x53   :  { %2954 = vmatprep.mubr.msk.bf16.mxu0 %vm3485_vm0, %v3484_v0  ;;  %3070 = vmatprep.mubr.msk.bf16.mxu1 %vm3485_vm0, %v3484_v0  ;;  %v3437_v22 = vld [vmem:[%s4301_s3 + $0x8] sm:$0xff]  }
  0x5a   :  { %2955 = vmatmul.mubr.bf16.gmra.mxu0 %v3398_v23  ;;  %3071 = vmatmul.mubr.bf16.gmra.mxu1 %v3399_v24 }
  0x5b   :  { %2958 = vmatprep.mubr.msk.bf16.mxu0 %vm3485_vm0, %v3484_v0  ;;  %3074 = vmatprep.mubr.msk.bf16.mxu1 %vm3485_vm0, %v3484_v0 }
  0x62   :  { %2959 = vmatmul.mubr.bf16.gmra.mxu0 %v3400_v25  ;;  %3075 = vmatmul.mubr.bf16.gmra.mxu1 %v3401_v26 }
  0x63   :  { %2962 = vmatprep.mubr.msk.bf16.mxu0 %vm3485_vm0, %v3484_v0  ;;  %3078 = vmatprep.mubr.msk.bf16.mxu1 %vm3485_vm0, %v3484_v0 }
  0x6a   :  { %2963 = vmatmul.mubr.bf16.gmra.mxu0 %v3402_v27  ;;  %3079 = vmatmul.mubr.bf16.gmra.mxu1 %v3403_v28 }
  0x6b   :  { %2966 = vmatprep.mubr.msk.bf16.mxu0 %vm3485_vm0, %v3484_v0  ;;  %3082 = vmatprep.mubr.msk.bf16.mxu1 %vm3485_vm0, %v3484_v0 }
  0x72   :  { %2967 = vmatmul.mubr.bf16.gmra.mxu0 %v3404_v29  ;;  %3083 = vmatmul.mubr.bf16.gmra.mxu1 %v3405_v30 }
  0x73   :  { %2970 = vmatprep.mubr.msk.bf16.mxu0 %vm3485_vm0, %v3484_v0  ;;  %3086 = vmatprep.mubr.msk.bf16.mxu1 %vm3485_vm0, %v3484_v0 }
  0x7a   :  { %2971 = vmatmul.mubr.bf16.gmra.mxu0 %v3406_v31  ;;  %3087 = vmatmul.mubr.bf16.gmra.mxu1 %v3407_v32 }
  0x7b   :  { %2974 = vmatprep.mubr.msk.bf16.mxu0 %vm3485_vm0, %v3484_v0  ;;  %3090 = vmatprep.mubr.msk.bf16.mxu1 %vm3485_vm0, %v3484_v0 }
  0x82   :  { %2975 = vmatmul.mubr.bf16.gmra.mxu0 %v3408_v33  ;;  %3091 = vmatmul.mubr.bf16.gmra.mxu1 %v3409_v34 }
  0x83   :  { %2978 = vmatprep.mubr.msk.bf16.mxu0 %vm3485_vm0, %v3484_v0  ;;  %3094 = vmatprep.mubr.msk.bf16.mxu1 %vm3485_vm0, %v3484_v0 }
  0x8a   :  { %2979 = vmatmul.mubr.bf16.gmra.mxu0 %v3410_v35  ;;  %3095 = vmatmul.mubr.bf16.gmra.mxu1 %v3411_v36 }
  0x8b   :  { %2982 = vmatprep.mubr.msk.bf16.mxu0 %vm3485_vm0, %v3484_v0  ;;  %3098 = vmatprep.mubr.msk.bf16.mxu1 %vm3485_vm0, %v3484_v0 }
  0x92   :  { %2983 = vmatmul.mubr.bf16.gmra.mxu0 %v3412_v37  ;;  %3099 = vmatmul.mubr.bf16.gmra.mxu1 %v3413_v38  ;;  %v3438_v37 = vld [vmem:[%s4300_s2 + $0x10] sm:$0xff]  }
  0x93   :  { %2986 = vmatprep.mubr.msk.bf16.mxu0 %vm3485_vm0, %v3484_v0  ;;  %3102 = vmatprep.mubr.msk.bf16.mxu1 %vm3485_vm0, %v3484_v0  ;;  %v3439_v38 = vld [vmem:[%s4301_s3 + $0x10] sm:$0xff]  }
  0x9a   :  { %2987 = vmatmul.mubr.bf16.gmra.mxu0 %v3414_v39  ;;  %3103 = vmatmul.mubr.bf16.gmra.mxu1 %v3415_v40 }
  0x9b   :  { %2990 = vmatprep.mubr.msk.bf16.mxu0 %vm3485_vm0, %v3484_v0  ;;  %3106 = vmatprep.mubr.msk.bf16.mxu1 %vm3485_vm0, %v3484_v0 }
  0xa2   :  { %2991 = vmatmul.mubr.bf16.gmra.mxu0 %v3416_v41  ;;  %3107 = vmatmul.mubr.bf16.gmra.mxu1 %v3417_v42 }
  0xa3   :  { %2994 = vmatprep.mubr.msk.bf16.mxu0 %vm3485_vm0, %v3484_v0  ;;  %3110 = vmatprep.mubr.msk.bf16.mxu1 %vm3485_vm0, %v3484_v0 }
  0xaa   :  { %2995 = vmatmul.mubr.bf16.gmra.mxu0 %v3418_v43  ;;  %3111 = vmatmul.mubr.bf16.gmra.mxu1 %v3419_v44 }
  0xab   :  { %2998 = vmatprep.mubr.msk.bf16.mxu0 %vm3485_vm0, %v3484_v0  ;;  %3114 = vmatprep.mubr.msk.bf16.mxu1 %vm3485_vm0, %v3484_v0 }
  0xb2   :  { %2999 = vmatmul.mubr.bf16.gmra.mxu0 %v3420_v45  ;;  %3115 = vmatmul.mubr.bf16.gmra.mxu1 %v3421_v46 }
  0xb3   :  { %3002 = vmatprep.mubr.msk.bf16.mxu0 %vm3485_vm0, %v3484_v0  ;;  %3118 = vmatprep.mubr.msk.bf16.mxu1 %vm3485_vm0, %v3484_v0 }
  0xba   :  { %3003 = vmatmul.mubr.bf16.gmra.mxu0 %v3422_v47  ;;  %3119 = vmatmul.mubr.bf16.gmra.mxu1 %v3423_v48 }
  0xbb   :  { %3006 = vmatprep.mubr.msk.bf16.mxu0 %vm3485_vm0, %v3484_v0  ;;  %3122 = vmatprep.mubr.msk.bf16.mxu1 %vm3485_vm0, %v3484_v0 }
  0xc2   :  { %3007 = vmatmul.mubr.bf16.gmra.mxu0 %v3424_v49  ;;  %3123 = vmatmul.mubr.bf16.gmra.mxu1 %v3425_v50 }
  0xc3   :  { %3010 = vmatprep.mubr.msk.bf16.mxu0 %vm3485_vm0, %v3484_v0  ;;  %3126 = vmatprep.mubr.msk.bf16.mxu1 %vm3485_vm0, %v3484_v0 }
  0xca   :  { %3011 = vmatmul.mubr.bf16.gmra.mxu0 %v3426_v51  ;;  %3127 = vmatmul.mubr.bf16.gmra.mxu1 %v3427_v52 }
  0xcb   :  { %3014 = vmatprep.mubr.msk.bf16.mxu0 %vm3485_vm0, %v3484_v0  ;;  %3130 = vmatprep.mubr.msk.bf16.mxu1 %vm3485_vm0, %v3484_v0 }
  0xd2   :  { %3015 = vmatmul.mubr.bf16.gmra.mxu0 %v3428_v53  ;;  %3131 = vmatmul.mubr.bf16.gmra.mxu1 %v3429_v54  ;;  %v3440_v53 = vld [vmem:[%s4300_s2 + $0x18] sm:$0xff]  }
  0xd3   :  { %3018 = vmatprep.mubr.msk.bf16.mxu0 %vm3485_vm0, %v3484_v0  ;;  %3134 = vmatprep.mubr.msk.bf16.mxu1 %vm3485_vm0, %v3484_v0  ;;  %v3441_v54 = vld [vmem:[%s4301_s3 + $0x18] sm:$0xff]  }
  0xda   :  { %3019 = vmatmul.mubr.bf16.gmra.mxu0 %v3430_v55  ;;  %3135 = vmatmul.mubr.bf16.gmra.mxu1 %v3431_v56 }
  0xdb   :  { %3022 = vmatprep.mubr.msk.bf16.mxu0 %vm3485_vm0, %v3484_v0  ;;  %3138 = vmatprep.mubr.msk.bf16.mxu1 %vm3485_vm0, %v3484_v0 }
  0xe2   :  { %v319_v59 = vpop.f32.mrf.mxu0  ;;  %3023 = vmatmul.mubr.bf16.gmra.mxu0 %v3432_v57  ;;  %v802_v60 = vpop.f32.mrf.mxu1  ;;  %3139 = vmatmul.mubr.bf16.gmra.mxu1 %v3433_v58 }
  0xe3   :  { %v518_v61 = vmax.f32 %v319_v59, 0.0  ;;  %v1001_v62 = vmax.f32 %v802_v60, 0.0  ;;  %3158 = vmatprep.mubr.msk.bf16.mxu0 %vm3485_vm0, %v3484_v0  ;;  %3274 = vmatprep.mubr.msk.bf16.mxu1 %vm3485_vm0, %v3484_v0 }
  0xe4   :  { %v2928_v63 = vpop.f32.mrf.mxu0  ;;  %v3044_v1 = vpop.f32.mrf.mxu1 }
  0xe5   :  { %v3826_v2 = vmax.f32 %v518_v61, %v1001_v62 }
  0xe6   :  { %v322_v3 = vpop.f32.mrf.mxu0  ;;  %v805_v4 = vpop.f32.mrf.mxu1 }
  0xe7   :  { %v519_v7 = vmax.f32 %v322_v3, 0.0  ;;  %v1002_v8 = vmax.f32 %v805_v4, 0.0 }
  0xe8   :  { %v2929_v9 = vpop.f32.mrf.mxu0  ;;  %v3045_v10 = vpop.f32.mrf.mxu1 }
  0xe9   :  { %v3834_v11 = vmax.f32 %v519_v7, %v1002_v8  ;;  %v3442_v7 = vld [vmem:[%s4300_s2 + $0x20] sm:$0xff]  }
  0xea   :  { %v327_v12 = vpop.f32.mrf.mxu0  ;;  %v810_v13 = vpop.f32.mrf.mxu1  ;;  %3159 = vmatmul.mubr.bf16.vlgmr.msra.gmra.mxu0 %v3434_v5  ;;  %3275 = vmatmul.mubr.bf16.vlgmr.msra.gmra.mxu1 %v3435_v6  ;;  %v3443_v8 = vld [vmem:[%s4301_s3 + $0x20] sm:$0xff]  }
  0xeb   :  { %v520_v14 = vmax.f32 %v327_v12, 0.0  ;;  %v1003_v15 = vmax.f32 %v810_v13, 0.0  ;;  %3162 = vmatprep.mubr.msk.bf16.mxu0 %vm3485_vm0, %v3484_v0  ;;  %3278 = vmatprep.mubr.msk.bf16.mxu1 %vm3485_vm0, %v3484_v0 }
  0xec   :  { %v2932_v16 = vpop.f32.mrf.mxu0  ;;  %v3048_v17 = vpop.f32.mrf.mxu1 }
  0xed   :  { %v3840_v18 = vmax.f32 %v520_v14, %v1003_v15 }
  0xee   :  { %v330_v19 = vpop.f32.mrf.mxu0  ;;  %v813_v20 = vpop.f32.mrf.mxu1 }
  0xef   :  { %v521_v23 = vmax.f32 %v330_v19, 0.0  ;;  %v1004_v24 = vmax.f32 %v813_v20, 0.0 }
  0xf0   :  { %v2933_v25 = vpop.f32.mrf.mxu0  ;;  %v3049_v26 = vpop.f32.mrf.mxu1 }
  0xf1   :  { %v3848_v27 = vmax.f32 %v521_v23, %v1004_v24  ;;  %v3444_v25 = vld [vmem:[%s4300_s2 + $0x28] sm:$0xff]  }
  0xf2   :  { %v335_v28 = vpop.f32.mrf.mxu0  ;;  %v818_v29 = vpop.f32.mrf.mxu1  ;;  %3163 = vmatmul.mubr.bf16.gmra.mxu0 %v3436_v21  ;;  %3279 = vmatmul.mubr.bf16.gmra.mxu1 %v3437_v22  ;;  %v3445_v26 = vld [vmem:[%s4301_s3 + $0x28] sm:$0xff]  }
  0xf3   :  { %v522_v30 = vmax.f32 %v335_v28, 0.0  ;;  %v1005_v31 = vmax.f32 %v818_v29, 0.0  ;;  %3166 = vmatprep.mubr.msk.bf16.mxu0 %vm3485_vm0, %v3484_v0  ;;  %3282 = vmatprep.mubr.msk.bf16.mxu1 %vm3485_vm0, %v3484_v0 }
  0xf4   :  { %v2936_v32 = vpop.f32.mrf.mxu0  ;;  %v3052_v33 = vpop.f32.mrf.mxu1 }
  0xf5   :  { %v3854_v34 = vmax.f32 %v522_v30, %v1005_v31 }
  0xf6   :  { %v338_v35 = vpop.f32.mrf.mxu0  ;;  %v821_v36 = vpop.f32.mrf.mxu1 }
  0xf7   :  { %v523_v39 = vmax.f32 %v338_v35, 0.0  ;;  %v1006_v40 = vmax.f32 %v821_v36, 0.0 }
  0xf8   :  { %v2937_v41 = vpop.f32.mrf.mxu0  ;;  %v3053_v42 = vpop.f32.mrf.mxu1 }
  0xf9   :  { %v3862_v43 = vmax.f32 %v523_v39, %v1006_v40 }
  0xfa   :  { %v343_v44 = vpop.f32.mrf.mxu0  ;;  %v826_v45 = vpop.f32.mrf.mxu1  ;;  %3167 = vmatmul.mubr.bf16.gmra.mxu0 %v3438_v37  ;;  %3283 = vmatmul.mubr.bf16.gmra.mxu1 %v3439_v38 }
  0xfb   :  { %v524_v46 = vmax.f32 %v343_v44, 0.0  ;;  %v1007_v47 = vmax.f32 %v826_v45, 0.0  ;;  %3170 = vmatprep.mubr.msk.bf16.mxu0 %vm3485_vm0, %v3484_v0  ;;  %3286 = vmatprep.mubr.msk.bf16.mxu1 %vm3485_vm0, %v3484_v0  ;;  %v3446_v44 = vld [vmem:[%s4300_s2 + $0x30] sm:$0xff]  }
  0xfc   :  { %v2940_v48 = vpop.f32.mrf.mxu0  ;;  %v3056_v49 = vpop.f32.mrf.mxu1  ;;  %v3447_v45 = vld [vmem:[%s4301_s3 + $0x30] sm:$0xff]  }
  0xfd   :  { %v3868_v50 = vmax.f32 %v524_v46, %v1007_v47 }
  0xfe   :  { %v346_v51 = vpop.f32.mrf.mxu0  ;;  %v829_v52 = vpop.f32.mrf.mxu1 }
  0xff   :  { %v525_v55 = vmax.f32 %v346_v51, 0.0  ;;  %v1008_v56 = vmax.f32 %v829_v52, 0.0 }
 0x100   :  { %v2941_v57 = vpop.f32.mrf.mxu0  ;;  %v3057_v58 = vpop.f32.mrf.mxu1 }
 0x101   :  { %v3876_v59 = vmax.f32 %v525_v55, %v1008_v56 }
 0x102   :  { %v351_v60 = vpop.f32.mrf.mxu0  ;;  %v834_v61 = vpop.f32.mrf.mxu1  ;;  %3171 = vmatmul.mubr.bf16.gmra.mxu0 %v3440_v53  ;;  %3287 = vmatmul.mubr.bf16.gmra.mxu1 %v3441_v54 }
 0x103   :  { %v526_v62 = vmax.f32 %v351_v60, 0.0  ;;  %v1009_v63 = vmax.f32 %v834_v61, 0.0  ;;  %3174 = vmatprep.mubr.msk.bf16.mxu0 %vm3485_vm0, %v3484_v0  ;;  %3290 = vmatprep.mubr.msk.bf16.mxu1 %vm3485_vm0, %v3484_v0 }
 0x104   :  { %v2944_v1 = vpop.f32.mrf.mxu0  ;;  %v3060_v3 = vpop.f32.mrf.mxu1 }
 0x105   :  { %v3882_v4 = vmax.f32 %v526_v62, %v1009_v63  ;;  %v3448_v62 = vld [vmem:[%s4300_s2 + $0x38] sm:$0xff]  }
 0x106   :  { %v354_v5 = vpop.f32.mrf.mxu0  ;;  %v837_v6 = vpop.f32.mrf.mxu1  ;;  %v3449_v63 = vld [vmem:[%s4301_s3 + $0x38] sm:$0xff]  }
 0x107   :  { %v527_v9 = vmax.f32 %v354_v5, 0.0  ;;  %v1010_v10 = vmax.f32 %v837_v6, 0.0 }
 0x108   :  { %v2945_v12 = vpop.f32.mrf.mxu0  ;;  %v3061_v13 = vpop.f32.mrf.mxu1 }
 0x109   :  { %v3890_v14 = vmax.f32 %v527_v9, %v1010_v10 }
 0x10a   :  { %v359_v15 = vpop.f32.mrf.mxu0  ;;  %v842_v16 = vpop.f32.mrf.mxu1  ;;  %3175 = vmatmul.mubr.bf16.gmra.mxu0 %v3442_v7  ;;  %3291 = vmatmul.mubr.bf16.gmra.mxu1 %v3443_v8 }
 0x10b   :  { %v528_v17 = vmax.f32 %v359_v15, 0.0  ;;  %v1011_v19 = vmax.f32 %v842_v16, 0.0  ;;  %3178 = vmatprep.mubr.msk.bf16.mxu0 %vm3485_vm0, %v3484_v0  ;;  %3294 = vmatprep.mubr.msk.bf16.mxu1 %vm3485_vm0, %v3484_v0 }
 0x10c   :  { %v2948_v20 = vpop.f32.mrf.mxu0  ;;  %v3064_v21 = vpop.f32.mrf.mxu1 }
 0x10d   :  { %v3896_v22 = vmax.f32 %v528_v17, %v1011_v19  ;;  %v3450_v20 = vld [vmem:[%s4300_s2 + $0x40] sm:$0xff]  }
 0x10e   :  { %v362_v23 = vpop.f32.mrf.mxu0  ;;  %v845_v24 = vpop.f32.mrf.mxu1  ;;  %v3451_v21 = vld [vmem:[%s4301_s3 + $0x40] sm:$0xff]  }
 0x10f   :  { %v529_v28 = vmax.f32 %v362_v23, 0.0  ;;  %v1012_v29 = vmax.f32 %v845_v24, 0.0 }
 0x110   :  { %v2949_v30 = vpop.f32.mrf.mxu0  ;;  %v3065_v31 = vpop.f32.mrf.mxu1 }
 0x111   :  { %v3904_v32 = vmax.f32 %v529_v28, %v1012_v29 }
 0x112   :  { %v367_v33 = vpop.f32.mrf.mxu0  ;;  %v850_v35 = vpop.f32.mrf.mxu1  ;;  %3179 = vmatmul.mubr.bf16.gmra.mxu0 %v3444_v25  ;;  %3295 = vmatmul.mubr.bf16.gmra.mxu1 %v3445_v26 }
 0x113   :  { %v530_v36 = vmax.f32 %v367_v33, 0.0  ;;  %v1013_v37 = vmax.f32 %v850_v35, 0.0  ;;  %3182 = vmatprep.mubr.msk.bf16.mxu0 %vm3485_vm0, %v3484_v0  ;;  %3298 = vmatprep.mubr.msk.bf16.mxu1 %vm3485_vm0, %v3484_v0 }
 0x114   :  { %v2952_v38 = vpop.f32.mrf.mxu0  ;;  %v3068_v39 = vpop.f32.mrf.mxu1 }
 0x115   :  { %v3910_v40 = vmax.f32 %v530_v36, %v1013_v37 }
 0x116   :  { %v370_v41 = vpop.f32.mrf.mxu0  ;;  %v853_v42 = vpop.f32.mrf.mxu1 }
 0x117   :  { %v531_v46 = vmax.f32 %v370_v41, 0.0  ;;  %v1014_v47 = vmax.f32 %v853_v42, 0.0  ;;  %v3452_v41 = vld [vmem:[%s4300_s2 + $0x48] sm:$0xff]  }
 0x118   :  { %v2953_v48 = vpop.f32.mrf.mxu0  ;;  %v3069_v49 = vpop.f32.mrf.mxu1  ;;  %v3453_v42 = vld [vmem:[%s4301_s3 + $0x48] sm:$0xff]  }
 0x119   :  { %v3918_v51 = vmax.f32 %v531_v46, %v1014_v47 }
 0x11a   :  { %v375_v52 = vpop.f32.mrf.mxu0  ;;  %v858_v53 = vpop.f32.mrf.mxu1  ;;  %3183 = vmatmul.mubr.bf16.gmra.mxu0 %v3446_v44  ;;  %3299 = vmatmul.mubr.bf16.gmra.mxu1 %v3447_v45 }
 0x11b   :  { %v532_v54 = vmax.f32 %v375_v52, 0.0  ;;  %v1015_v55 = vmax.f32 %v858_v53, 0.0  ;;  %3186 = vmatprep.mubr.msk.bf16.mxu0 %vm3485_vm0, %v3484_v0  ;;  %3302 = vmatprep.mubr.msk.bf16.mxu1 %vm3485_vm0, %v3484_v0 }
 0x11c   :  { %v2956_v56 = vpop.f32.mrf.mxu0  ;;  %v3072_v57 = vpop.f32.mrf.mxu1 }
 0x11d   :  { %v3924_v58 = vmax.f32 %v532_v54, %v1015_v55 }
 0x11e   :  { %v378_v60 = vpop.f32.mrf.mxu0  ;;  %v861_v61 = vpop.f32.mrf.mxu1 }
 0x11f   :  { %v533_v1 = vmax.f32 %v378_v60, 0.0  ;;  %v1016_v3 = vmax.f32 %v861_v61, 0.0 }
 0x120   :  { %v2957_v5 = vpop.f32.mrf.mxu0  ;;  %v3073_v6 = vpop.f32.mrf.mxu1 }
 0x121   :  { %v3932_v7 = vmax.f32 %v533_v1, %v1016_v3 }
 0x122   :  { %v383_v8 = vpop.f32.mrf.mxu0  ;;  %v866_v9 = vpop.f32.mrf.mxu1  ;;  %3187 = vmatmul.mubr.bf16.gmra.mxu0 %v3448_v62  ;;  %3303 = vmatmul.mubr.bf16.gmra.mxu1 %v3449_v63  ;;  %v3454_v62 = vld [vmem:[%s4300_s2 + $0x50] sm:$0xff]  }
 0x123   :  { %v534_v10 = vmax.f32 %v383_v8, 0.0  ;;  %v1017_v12 = vmax.f32 %v866_v9, 0.0  ;;  %3190 = vmatprep.mubr.msk.bf16.mxu0 %vm3485_vm0, %v3484_v0  ;;  %3306 = vmatprep.mubr.msk.bf16.mxu1 %vm3485_vm0, %v3484_v0  ;;  %v3455_v63 = vld [vmem:[%s4301_s3 + $0x50] sm:$0xff]  }
 0x124   :  { %v2960_v13 = vpop.f32.mrf.mxu0  ;;  %v3076_v15 = vpop.f32.mrf.mxu1 }
 0x125   :  { %v3938_v16 = vmax.f32 %v534_v10, %v1017_v12 }
 0x126   :  { %v386_v17 = vpop.f32.mrf.mxu0  ;;  %v869_v19 = vpop.f32.mrf.mxu1 }
 0x127   :  { %v535_v23 = vmax.f32 %v386_v17, 0.0  ;;  %v1018_v24 = vmax.f32 %v869_v19, 0.0 }
 0x128   :  { %v2961_v25 = vpop.f32.mrf.mxu0  ;;  %v3077_v26 = vpop.f32.mrf.mxu1 }
 0x129   :  { %v3946_v28 = vmax.f32 %v535_v23, %v1018_v24  ;;  %v3456_v23 = vld [vmem:[%s4300_s2 + $0x58] sm:$0xff]  }
 0x12a   :  { %v391_v29 = vpop.f32.mrf.mxu0  ;;  %v874_v30 = vpop.f32.mrf.mxu1  ;;  %3191 = vmatmul.mubr.bf16.gmra.mxu0 %v3450_v20  ;;  %3307 = vmatmul.mubr.bf16.gmra.mxu1 %v3451_v21  ;;  %v3457_v24 = vld [vmem:[%s4301_s3 + $0x58] sm:$0xff]  }
 0x12b   :  { %v536_v31 = vmax.f32 %v391_v29, 0.0  ;;  %v1019_v33 = vmax.f32 %v874_v30, 0.0  ;;  %3194 = vmatprep.mubr.msk.bf16.mxu0 %vm3485_vm0, %v3484_v0  ;;  %3310 = vmatprep.mubr.msk.bf16.mxu1 %vm3485_vm0, %v3484_v0 }
 0x12c   :  { %v2964_v35 = vpop.f32.mrf.mxu0  ;;  %v3080_v36 = vpop.f32.mrf.mxu1 }
 0x12d   :  { %v3952_v37 = vmax.f32 %v536_v31, %v1019_v33 }
 0x12e   :  { %v394_v38 = vpop.f32.mrf.mxu0  ;;  %v877_v39 = vpop.f32.mrf.mxu1 }
 0x12f   :  { %v537_v44 = vmax.f32 %v394_v38, 0.0  ;;  %v1020_v45 = vmax.f32 %v877_v39, 0.0 }
 0x130   :  { %v2965_v46 = vpop.f32.mrf.mxu0  ;;  %v3081_v47 = vpop.f32.mrf.mxu1 }
 0x131   :  { %v3960_v48 = vmax.f32 %v537_v44, %v1020_v45  ;;  %v3458_v46 = vld [vmem:[%s4300_s2 + $0x60] sm:$0xff]  }
 0x132   :  { %v399_v49 = vpop.f32.mrf.mxu0  ;;  %v882_v52 = vpop.f32.mrf.mxu1  ;;  %3195 = vmatmul.mubr.bf16.gmra.mxu0 %v3452_v41  ;;  %3311 = vmatmul.mubr.bf16.gmra.mxu1 %v3453_v42  ;;  %v3459_v47 = vld [vmem:[%s4301_s3 + $0x60] sm:$0xff]  }
 0x133   :  { %v538_v53 = vmax.f32 %v399_v49, 0.0  ;;  %v1021_v54 = vmax.f32 %v882_v52, 0.0  ;;  %3198 = vmatprep.mubr.msk.bf16.mxu0 %vm3485_vm0, %v3484_v0  ;;  %3314 = vmatprep.mubr.msk.bf16.mxu1 %vm3485_vm0, %v3484_v0 }
 0x134   :  { %v2968_v55 = vpop.f32.mrf.mxu0  ;;  %v3084_v56 = vpop.f32.mrf.mxu1 }
 0x135   :  { %v3966_v57 = vmax.f32 %v538_v53, %v1021_v54 }
 0x136   :  { %v402_v60 = vpop.f32.mrf.mxu0  ;;  %v885_v61 = vpop.f32.mrf.mxu1 }
 0x137   :  { %v539_v1 = vmax.f32 %v402_v60, 0.0  ;;  %v1022_v3 = vmax.f32 %v885_v61, 0.0 }
 0x138   :  { %v2969_v5 = vpop.f32.mrf.mxu0  ;;  %v3085_v6 = vpop.f32.mrf.mxu1 }
 0x139   :  { %v3974_v8 = vmax.f32 %v539_v1, %v1022_v3 }
 0x13a   :  { %v407_v9 = vpop.f32.mrf.mxu0  ;;  %v890_v10 = vpop.f32.mrf.mxu1  ;;  %3199 = vmatmul.mubr.bf16.gmra.mxu0 %v3454_v62  ;;  %3315 = vmatmul.mubr.bf16.gmra.mxu1 %v3455_v63 }
 0x13b   :  { %v540_v12 = vmax.f32 %v407_v9, 0.0  ;;  %v1023_v13 = vmax.f32 %v890_v10, 0.0  ;;  %3202 = vmatprep.mubr.msk.bf16.mxu0 %vm3485_vm0, %v3484_v0  ;;  %3318 = vmatprep.mubr.msk.bf16.mxu1 %vm3485_vm0, %v3484_v0  ;;  %v3460_v9 = vld [vmem:[%s4300_s2 + $0x68] sm:$0xff]  }
 0x13c   :  { %v2972_v15 = vpop.f32.mrf.mxu0  ;;  %v3088_v17 = vpop.f32.mrf.mxu1  ;;  %v3461_v10 = vld [vmem:[%s4301_s3 + $0x68] sm:$0xff]  }
 0x13d   :  { %v3980_v19 = vmax.f32 %v540_v12, %v1023_v13 }
 0x13e   :  { %v410_v20 = vpop.f32.mrf.mxu0  ;;  %v893_v21 = vpop.f32.mrf.mxu1 }
 0x13f   :  { %v541_v25 = vmax.f32 %v410_v20, 0.0  ;;  %v1024_v26 = vmax.f32 %v893_v21, 0.0 }
 0x140   :  { %v2973_v29 = vpop.f32.mrf.mxu0  ;;  %v3089_v30 = vpop.f32.mrf.mxu1 }
 0x141   :  { %v3988_v31 = vmax.f32 %v541_v25, %v1024_v26 }
 0x142   :  { %v415_v33 = vpop.f32.mrf.mxu0  ;;  %v898_v35 = vpop.f32.mrf.mxu1  ;;  %3203 = vmatmul.mubr.bf16.gmra.mxu0 %v3456_v23  ;;  %3319 = vmatmul.mubr.bf16.gmra.mxu1 %v3457_v24 }
 0x143   :  { %v542_v36 = vmax.f32 %v415_v33, 0.0  ;;  %v1025_v38 = vmax.f32 %v898_v35, 0.0  ;;  %3206 = vmatprep.mubr.msk.bf16.mxu0 %vm3485_vm0, %v3484_v0  ;;  %3322 = vmatprep.mubr.msk.bf16.mxu1 %vm3485_vm0, %v3484_v0 }
 0x144   :  { %v2976_v39 = vpop.f32.mrf.mxu0  ;;  %v3092_v41 = vpop.f32.mrf.mxu1 }
 0x145   :  { %v3994_v42 = vmax.f32 %v542_v36, %v1025_v38  ;;  %v3462_v36 = vld [vmem:[%s4300_s2 + $0x70] sm:$0xff]  }
 0x146   :  { %v418_v44 = vpop.f32.mrf.mxu0  ;;  %v901_v45 = vpop.f32.mrf.mxu1  ;;  %v3463_v38 = vld [vmem:[%s4301_s3 + $0x70] sm:$0xff]  }
 0x147   :  { %v543_v49 = vmax.f32 %v418_v44, 0.0  ;;  %v1026_v52 = vmax.f32 %v901_v45, 0.0 }
 0x148   :  { %v2977_v53 = vpop.f32.mrf.mxu0  ;;  %v3093_v54 = vpop.f32.mrf.mxu1 }
 0x149   :  { %v4002_v55 = vmax.f32 %v543_v49, %v1026_v52 }
 0x14a   :  { %v423_v56 = vpop.f32.mrf.mxu0  ;;  %v906_v60 = vpop.f32.mrf.mxu1  ;;  %3207 = vmatmul.mubr.bf16.gmra.mxu0 %v3458_v46  ;;  %3323 = vmatmul.mubr.bf16.gmra.mxu1 %v3459_v47 }
 0x14b   :  { %v544_v61 = vmax.f32 %v423_v56, 0.0  ;;  %v1027_v62 = vmax.f32 %v906_v60, 0.0  ;;  %3210 = vmatprep.mubr.msk.bf16.mxu0 %vm3485_vm0, %v3484_v0  ;;  %3326 = vmatprep.mubr.msk.bf16.mxu1 %vm3485_vm0, %v3484_v0 }
 0x14c   :  { %v2980_v63 = vpop.f32.mrf.mxu0  ;;  %v3096_v1 = vpop.f32.mrf.mxu1 }
 0x14d   :  { %v4008_v3 = vmax.f32 %v544_v61, %v1027_v62  ;;  %v3464_v63 = vld [vmem:[%s4300_s2 + $0x78] sm:$0xff]  }
 0x14e   :  { %v426_v5 = vpop.f32.mrf.mxu0  ;;  %v909_v6 = vpop.f32.mrf.mxu1  ;;  %v3465_v1 = vld [vmem:[%s4301_s3 + $0x78] sm:$0xff]  }
 0x14f   :  { %v545_v12 = vmax.f32 %v426_v5, 0.0  ;;  %v1028_v13 = vmax.f32 %v909_v6, 0.0 }
 0x150   :  { %v2981_v15 = vpop.f32.mrf.mxu0  ;;  %v3097_v17 = vpop.f32.mrf.mxu1 }
 0x151   :  { %v4016_v20 = vmax.f32 %v545_v12, %v1028_v13 }
 0x152   :  { %v431_v21 = vpop.f32.mrf.mxu0  ;;  %v914_v23 = vpop.f32.mrf.mxu1  ;;  %3211 = vmatmul.mubr.bf16.gmra.mxu0 %v3460_v9  ;;  %3327 = vmatmul.mubr.bf16.gmra.mxu1 %v3461_v10 }
 0x153   :  { %v546_v24 = vmax.f32 %v431_v21, 0.0  ;;  %v1029_v25 = vmax.f32 %v914_v23, 0.0  ;;  %3214 = vmatprep.mubr.msk.bf16.mxu0 %vm3485_vm0, %v3484_v0  ;;  %3330 = vmatprep.mubr.msk.bf16.mxu1 %vm3485_vm0, %v3484_v0 }
 0x154   :  { %v2984_v26 = vpop.f32.mrf.mxu0  ;;  %v3100_v29 = vpop.f32.mrf.mxu1 }
 0x155   :  { %v4022_v30 = vmax.f32 %v546_v24, %v1029_v25 }
 0x156   :  { %v434_v33 = vpop.f32.mrf.mxu0  ;;  %v917_v35 = vpop.f32.mrf.mxu1 }
 0x157   :  { %v547_v39 = vmax.f32 %v434_v33, 0.0  ;;  %v1030_v41 = vmax.f32 %v917_v35, 0.0  ;;  %v3466_v33 = vld [vmem:[%s4300_s2 + $0x80] sm:$0xff]  }
 0x158   :  { %v2985_v44 = vpop.f32.mrf.mxu0  ;;  %v3101_v45 = vpop.f32.mrf.mxu1  ;;  %v3467_v35 = vld [vmem:[%s4301_s3 + $0x80] sm:$0xff]  }
 0x159   :  { %v4030_v46 = vmax.f32 %v547_v39, %v1030_v41 }
 0x15a   :  { %v439_v47 = vpop.f32.mrf.mxu0  ;;  %v922_v49 = vpop.f32.mrf.mxu1  ;;  %3215 = vmatmul.mubr.bf16.gmra.mxu0 %v3462_v36  ;;  %3331 = vmatmul.mubr.bf16.gmra.mxu1 %v3463_v38 }
 0x15b   :  { %v548_v52 = vmax.f32 %v439_v47, 0.0  ;;  %v1031_v53 = vmax.f32 %v922_v49, 0.0  ;;  %3218 = vmatprep.mubr.msk.bf16.mxu0 %vm3485_vm0, %v3484_v0  ;;  %3334 = vmatprep.mubr.msk.bf16.mxu1 %vm3485_vm0, %v3484_v0 }
 0x15c   :  { %v2988_v54 = vpop.f32.mrf.mxu0  ;;  %v3104_v56 = vpop.f32.mrf.mxu1 }
 0x15d   :  { %v4036_v60 = vmax.f32 %v548_v52, %v1031_v53 }
 0x15e   :  { %v442_v61 = vpop.f32.mrf.mxu0  ;;  %v925_v62 = vpop.f32.mrf.mxu1 }
 0x15f   :  { %v549_v5 = vmax.f32 %v442_v61, 0.0  ;;  %v1032_v6 = vmax.f32 %v925_v62, 0.0 }
 0x160   :  { %v2989_v9 = vpop.f32.mrf.mxu0  ;;  %v3105_v10 = vpop.f32.mrf.mxu1 }
 0x161   :  { %v4044_v12 = vmax.f32 %v549_v5, %v1032_v6 }
 0x162   :  { %v447_v13 = vpop.f32.mrf.mxu0  ;;  %v930_v15 = vpop.f32.mrf.mxu1  ;;  %3219 = vmatmul.mubr.bf16.gmra.mxu0 %v3464_v63  ;;  %3335 = vmatmul.mubr.bf16.gmra.mxu1 %v3465_v1  ;;  %v3468_v63 = vld [vmem:[%s4300_s2 + $0x88] sm:$0xff]  }
 0x163   :  { %v550_v17 = vmax.f32 %v447_v13, 0.0  ;;  %v1033_v21 = vmax.f32 %v930_v15, 0.0  ;;  %3222 = vmatprep.mubr.msk.bf16.mxu0 %vm3485_vm0, %v3484_v0  ;;  %3338 = vmatprep.mubr.msk.bf16.mxu1 %vm3485_vm0, %v3484_v0  ;;  %v3469_v1 = vld [vmem:[%s4301_s3 + $0x88] sm:$0xff]  }
 0x164   :  { %v2992_v23 = vpop.f32.mrf.mxu0  ;;  %v3108_v24 = vpop.f32.mrf.mxu1 }
 0x165   :  { %v4050_v25 = vmax.f32 %v550_v17, %v1033_v21 }
 0x166   :  { %v450_v26 = vpop.f32.mrf.mxu0  ;;  %v933_v29 = vpop.f32.mrf.mxu1 }
 0x167   :  { %v551_v36 = vmax.f32 %v450_v26, 0.0  ;;  %v1034_v38 = vmax.f32 %v933_v29, 0.0 }
 0x168   :  { %v2993_v39 = vpop.f32.mrf.mxu0  ;;  %v3109_v41 = vpop.f32.mrf.mxu1 }
 0x169   :  { %v4058_v44 = vmax.f32 %v551_v36, %v1034_v38  ;;  %v3470_v36 = vld [vmem:[%s4300_s2 + $0x90] sm:$0xff]  }
 0x16a   :  { %v455_v45 = vpop.f32.mrf.mxu0  ;;  %v938_v47 = vpop.f32.mrf.mxu1  ;;  %3223 = vmatmul.mubr.bf16.gmra.mxu0 %v3466_v33  ;;  %3339 = vmatmul.mubr.bf16.gmra.mxu1 %v3467_v35  ;;  %v3471_v38 = vld [vmem:[%s4301_s3 + $0x90] sm:$0xff]  }
 0x16b   :  { %v552_v49 = vmax.f32 %v455_v45, 0.0  ;;  %v1035_v52 = vmax.f32 %v938_v47, 0.0  ;;  %3226 = vmatprep.mubr.msk.bf16.mxu0 %vm3485_vm0, %v3484_v0  ;;  %3342 = vmatprep.mubr.msk.bf16.mxu1 %vm3485_vm0, %v3484_v0 }
 0x16c   :  { %v2996_v53 = vpop.f32.mrf.mxu0  ;;  %v3112_v54 = vpop.f32.mrf.mxu1 }
 0x16d   :  { %v4064_v56 = vmax.f32 %v552_v49, %v1035_v52 }
 0x16e   :  { %v458_v61 = vpop.f32.mrf.mxu0  ;;  %v941_v62 = vpop.f32.mrf.mxu1 }
 0x16f   :  { %v553_v5 = vmax.f32 %v458_v61, 0.0  ;;  %v1036_v6 = vmax.f32 %v941_v62, 0.0 }
 0x170   :  { %v2997_v9 = vpop.f32.mrf.mxu0  ;;  %v3113_v10 = vpop.f32.mrf.mxu1 }
 0x171   :  { %v4072_v13 = vmax.f32 %v553_v5, %v1036_v6  ;;  %v3472_v9 = vld [vmem:[%s4300_s2 + $0x98] sm:$0xff]  }
 0x172   :  { %v463_v15 = vpop.f32.mrf.mxu0  ;;  %v946_v17 = vpop.f32.mrf.mxu1  ;;  %3227 = vmatmul.mubr.bf16.gmra.mxu0 %v3468_v63  ;;  %3343 = vmatmul.mubr.bf16.gmra.mxu1 %v3469_v1  ;;  %v3473_v10 = vld [vmem:[%s4301_s3 + $0x98] sm:$0xff]  }
 0x173   :  { %v554_v21 = vmax.f32 %v463_v15, 0.0  ;;  %v1037_v23 = vmax.f32 %v946_v17, 0.0  ;;  %3230 = vmatprep.mubr.msk.bf16.mxu0 %vm3485_vm0, %v3484_v0  ;;  %3346 = vmatprep.mubr.msk.bf16.mxu1 %vm3485_vm0, %v3484_v0 }
 0x174   :  { %v3000_v24 = vpop.f32.mrf.mxu0  ;;  %v3116_v26 = vpop.f32.mrf.mxu1 }
 0x175   :  { %v4078_v29 = vmax.f32 %v554_v21, %v1037_v23 }
 0x176   :  { %v466_v33 = vpop.f32.mrf.mxu0  ;;  %v949_v35 = vpop.f32.mrf.mxu1 }
 0x177   :  { %v555_v39 = vmax.f32 %v466_v33, 0.0  ;;  %v1038_v41 = vmax.f32 %v949_v35, 0.0 }
 0x178   :  { %v3001_v45 = vpop.f32.mrf.mxu0  ;;  %v3117_v47 = vpop.f32.mrf.mxu1 }
 0x179   :  { %v4086_v49 = vmax.f32 %v555_v39, %v1038_v41 }
 0x17a   :  { %v471_v52 = vpop.f32.mrf.mxu0  ;;  %v954_v53 = vpop.f32.mrf.mxu1  ;;  %3231 = vmatmul.mubr.bf16.gmra.mxu0 %v3470_v36  ;;  %3347 = vmatmul.mubr.bf16.gmra.mxu1 %v3471_v38 }
 0x17b   :  { %v556_v54 = vmax.f32 %v471_v52, 0.0  ;;  %v1039_v61 = vmax.f32 %v954_v53, 0.0  ;;  %3234 = vmatprep.mubr.msk.bf16.mxu0 %vm3485_vm0, %v3484_v0  ;;  %3350 = vmatprep.mubr.msk.bf16.mxu1 %vm3485_vm0, %v3484_v0  ;;  %v3474_v52 = vld [vmem:[%s4300_s2 + $0xa0] sm:$0xff]  }
 0x17c   :  { %v3004_v62 = vpop.f32.mrf.mxu0  ;;  %v3120_v63 = vpop.f32.mrf.mxu1  ;;  %v3475_v53 = vld [vmem:[%s4301_s3 + $0xa0] sm:$0xff]  }
 0x17d   :  { %v4092_v1 = vmax.f32 %v556_v54, %v1039_v61 }
 0x17e   :  { %v474_v5 = vpop.f32.mrf.mxu0  ;;  %v957_v6 = vpop.f32.mrf.mxu1 }
 0x17f   :  { %v557_v15 = vmax.f32 %v474_v5, 0.0  ;;  %v1040_v17 = vmax.f32 %v957_v6, 0.0 }
 0x180   :  { %v3005_v21 = vpop.f32.mrf.mxu0  ;;  %v3121_v23 = vpop.f32.mrf.mxu1 }
 0x181   :  { %v4100_v24 = vmax.f32 %v557_v15, %v1040_v17 }
 0x182   :  { %v479_v26 = vpop.f32.mrf.mxu0  ;;  %v962_v33 = vpop.f32.mrf.mxu1  ;;  %3235 = vmatmul.mubr.bf16.gmra.mxu0 %v3472_v9  ;;  %3351 = vmatmul.mubr.bf16.gmra.mxu1 %v3473_v10 }
 0x183   :  { %v558_v35 = vmax.f32 %v479_v26, 0.0  ;;  %v1041_v36 = vmax.f32 %v962_v33, 0.0  ;;  %3238 = vmatprep.mubr.msk.bf16.mxu0 %vm3485_vm0, %v3484_v0  ;;  %3354 = vmatprep.mubr.msk.bf16.mxu1 %vm3485_vm0, %v3484_v0 }
 0x184   :  { %v3008_v38 = vpop.f32.mrf.mxu0  ;;  %v3124_v39 = vpop.f32.mrf.mxu1 }
 0x185   :  { %v4106_v41 = vmax.f32 %v558_v35, %v1041_v36  ;;  %v3476_v35 = vld [vmem:[%s4300_s2 + $0xa8] sm:$0xff]  }
 0x186   :  { %v482_v45 = vpop.f32.mrf.mxu0  ;;  %v965_v47 = vpop.f32.mrf.mxu1  ;;  %v3477_v36 = vld [vmem:[%s4301_s3 + $0xa8] sm:$0xff]  }
 0x187   :  { %v559_v54 = vmax.f32 %v482_v45, 0.0  ;;  %v1042_v61 = vmax.f32 %v965_v47, 0.0 }
 0x188   :  { %v3009_v62 = vpop.f32.mrf.mxu0  ;;  %v3125_v63 = vpop.f32.mrf.mxu1 }
 0x189   :  { %v4114_v5 = vmax.f32 %v559_v54, %v1042_v61 }
 0x18a   :  { %v487_v6 = vpop.f32.mrf.mxu0  ;;  %v970_v9 = vpop.f32.mrf.mxu1  ;;  %3239 = vmatmul.mubr.bf16.gmra.mxu0 %v3474_v52  ;;  %3355 = vmatmul.mubr.bf16.gmra.mxu1 %v3475_v53 }
 0x18b   :  { %v560_v10 = vmax.f32 %v487_v6, 0.0  ;;  %v1043_v15 = vmax.f32 %v970_v9, 0.0  ;;  %3242 = vmatprep.mubr.msk.bf16.mxu0 %vm3485_vm0, %v3484_v0  ;;  %3358 = vmatprep.mubr.msk.bf16.mxu1 %vm3485_vm0, %v3484_v0 }
 0x18c   :  { %v3012_v17 = vpop.f32.mrf.mxu0  ;;  %v3128_v21 = vpop.f32.mrf.mxu1 }
 0x18d   :  { %v4120_v23 = vmax.f32 %v560_v10, %v1043_v15  ;;  %v3478_v17 = vld [vmem:[%s4300_s2 + $0xb0] sm:$0xff]  }
 0x18e   :  { %v490_v26 = vpop.f32.mrf.mxu0  ;;  %v973_v33 = vpop.f32.mrf.mxu1  ;;  %v3479_v21 = vld [vmem:[%s4301_s3 + $0xb0] sm:$0xff]  }
 0x18f   :  { %v561_v38 = vmax.f32 %v490_v26, 0.0  ;;  %v1044_v39 = vmax.f32 %v973_v33, 0.0 }
 0x190   :  { %v3013_v45 = vpop.f32.mrf.mxu0  ;;  %v3129_v47 = vpop.f32.mrf.mxu1 }
 0x191   :  { %v4128_v52 = vmax.f32 %v561_v38, %v1044_v39 }
 0x192   :  { %v495_v53 = vpop.f32.mrf.mxu0  ;;  %v978_v54 = vpop.f32.mrf.mxu1  ;;  %3243 = vmatmul.mubr.bf16.gmra.mxu0 %v3476_v35  ;;  %3359 = vmatmul.mubr.bf16.gmra.mxu1 %v3477_v36 }
 0x193   :  { %4303 = vst [vmem:[#allocation2_spill] sm:$0xff] %v4128_v52  ;;  %v562_v61 = vmax.f32 %v495_v53, 0.0  ;;  %v1045_v62 = vmax.f32 %v978_v54, 0.0  ;;  %3246 = vmatprep.mubr.msk.bf16.mxu0 %vm3485_vm0, %v3484_v0  ;;  %3362 = vmatprep.mubr.msk.bf16.mxu1 %vm3485_vm0, %v3484_v0 }
 0x194   :  { %v3016_v63 = vpop.f32.mrf.mxu0  ;;  %v3132_v6 = vpop.f32.mrf.mxu1 }
 0x195   :  { %v4134_v9 = vmax.f32 %v562_v61, %v1045_v62 }
 0x196   :  { %v498_v10 = vpop.f32.mrf.mxu0  ;;  %v981_v15 = vpop.f32.mrf.mxu1 }
 0x197   :  { %4304 = vst [vmem:[#allocation3_spill] sm:$0xff] %v4134_v9  ;;  %v563_v26 = vmax.f32 %v498_v10, 0.0  ;;  %v1046_v33 = vmax.f32 %v981_v15, 0.0  ;;  %v3480_v10 = vld [vmem:[%s4300_s2 + $0xb8] sm:$0xff]  }
 0x198   :  { %v3017_v35 = vpop.f32.mrf.mxu0  ;;  %v3133_v36 = vpop.f32.mrf.mxu1  ;;  %v3481_v15 = vld [vmem:[%s4301_s3 + $0xb8] sm:$0xff]  }
 0x199   :  { %v4142_v38 = vmax.f32 %v563_v26, %v1046_v33 }
 0x19a   :  { %v503_v39 = vpop.f32.mrf.mxu0  ;;  %v986_v45 = vpop.f32.mrf.mxu1  ;;  %3247 = vmatmul.mubr.bf16.gmra.mxu0 %v3478_v17  ;;  %3363 = vmatmul.mubr.bf16.gmra.mxu1 %v3479_v21 }
 0x19b   :  { %4305 = vst [vmem:[#allocation4_spill] sm:$0xff] %v4142_v38  ;;  %v564_v47 = vmax.f32 %v503_v39, 0.0  ;;  %v1047_v53 = vmax.f32 %v986_v45, 0.0  ;;  %3250 = vmatprep.mubr.msk.bf16.mxu0 %vm3485_vm0, %v3484_v0  ;;  %3366 = vmatprep.mubr.msk.bf16.mxu1 %vm3485_vm0, %v3484_v0 }
 0x19c   :  { %v3020_v54 = vpop.f32.mrf.mxu0  ;;  %v3136_v61 = vpop.f32.mrf.mxu1 }
 0x19d   :  { %v4148_v62 = vmax.f32 %v564_v47, %v1047_v53 }
 0x19e   :  { %v506_v63 = vpop.f32.mrf.mxu0  ;;  %v989_v6 = vpop.f32.mrf.mxu1 }
 0x19f   :  { %4306 = vst [vmem:[#allocation5_spill] sm:$0xff] %v4148_v62  ;;  %v565_v17 = vmax.f32 %v506_v63, 0.0  ;;  %v1048_v21 = vmax.f32 %v989_v6, 0.0 }
 0x1a0   :  { %v3021_v26 = vpop.f32.mrf.mxu0  ;;  %v3137_v33 = vpop.f32.mrf.mxu1 }
 0x1a1   :  { %v4156_v35 = vmax.f32 %v565_v17, %v1048_v21  ;;  %v3482_v17 = vld [vmem:[%s4300_s2 + $0xc0] sm:$0xff]  }
 0x1a2   :  { %v511_v36 = vpop.f32.mrf.mxu0  ;;  %v994_v39 = vpop.f32.mrf.mxu1  ;;  %3251 = vmatmul.mubr.bf16.gmra.mxu0 %v3480_v10  ;;  %3367 = vmatmul.mubr.bf16.gmra.mxu1 %v3481_v15  ;;  %v3483_v10 = vld [vmem:[%s4301_s3 + $0xc0] sm:$0xff]  }
 0x1a3   :  { %4307 = vst [vmem:[#allocation6_spill] sm:$0xff] %v4156_v35  ;;  %v566_v45 = vmax.f32 %v511_v36, 0.0  ;;  %v1049_v47 = vmax.f32 %v994_v39, 0.0  ;;  %3254 = vmatprep.mubr.msk.bf16.mxu0 %vm3485_vm0, %v3484_v0  ;;  %3370 = vmatprep.mubr.msk.bf16.mxu1 %vm3485_vm0, %v3484_v0 }
 0x1a4   :  { %v3024_v53 = vpop.f32.mrf.mxu0  ;;  %v3140_v54 = vpop.f32.mrf.mxu1 }
 0x1a5   :  { %v4162_v61 = vmax.f32 %v566_v45, %v1049_v47 }
 0x1a6   :  { %v514_v63 = vpop.f32.mrf.mxu0  ;;  %v997_v6 = vpop.f32.mrf.mxu1 }
 0x1a7   :  { %4308 = vst [vmem:[#allocation7_spill] sm:$0xff] %v4162_v61  ;;  %v567_v15 = vmax.f32 %v514_v63, 0.0  ;;  %v1050_v21 = vmax.f32 %v997_v6, 0.0 }
 0x1a8   :  { %v3025_v26 = vpop.f32.mrf.mxu0  ;;  %v3141_v33 = vpop.f32.mrf.mxu1 }
 0x1a9   :  { %v4170_v36 = vmax.f32 %v567_v15, %v1050_v21 }
 0x1aa   :  { %v1335_v0 = vpop.f32.mrf.mxu0  ;;  %3255 = vmatmul.mubr.bf16.gmra.mxu0 %v3482_v17  ;;  %v1818_v39 = vpop.f32.mrf.mxu1  ;;  %3371 = vmatmul.mubr.bf16.gmra.mxu1 %v3483_v10 }
 0x1ab   :  { %4309 = vst [vmem:[#allocation8_spill] sm:$0xff] %v4170_v36  ;;  %v1534_v45 = vmax.f32 %v1335_v0, 0.0  ;;  %v2017_v47 = vmax.f32 %v1818_v39, 0.0 }
 0x1ac   :  { %v3160_v53 = vpop.f32.mrf.mxu0  ;;  %v3276_v54 = vpop.f32.mrf.mxu1 }
 0x1ad   :  { %v2067_v62 = vmax.f32 %v1534_v45, %v2017_v47 }
 0x1ae   :  { %v1338_v61 = vpop.f32.mrf.mxu0  ;;  %v1821_v35 = vpop.f32.mrf.mxu1 }
 0x1af   :  { %v1535_v38 = vmax.f32 %v1338_v61, 0.0  ;;  %v2018_v9 = vmax.f32 %v1821_v35, 0.0  ;;  %v2117_v15 = vmax.f32 %v3826_v2, %v2067_v62 }
 0x1b0   :  { %v3161_v52 = vpop.f32.mrf.mxu0  ;;  %v3277_v63 = vpop.f32.mrf.mxu1 }
 0x1b1   :  { %v2068_v6 = vmax.f32 %v1535_v38, %v2018_v9 }
 0x1b2   :  { %v1343_v26 = vpop.f32.mrf.mxu0  ;;  %v1826_v33 = vpop.f32.mrf.mxu1 }
 0x1b3   :  { %v2118_v17 = vmax.f32 %v3834_v11, %v2068_v6  ;;  %v1536_v21 = vmax.f32 %v1343_v26, 0.0  ;;  %v2019_v10 = vmax.f32 %v1826_v33, 0.0 }
 0x1b4   :  { %v3164_v0 = vpop.f32.mrf.mxu0  ;;  %v3280_v39 = vpop.f32.mrf.mxu1 }
 0x1b5   :  { %v2632_v53 = vpack.c.bf16 %v2118_v17, %v2117_v15  ;;  %v2069_v52 = vmax.f32 %v1536_v21, %v2019_v10 }
 0x1b6   :  { %v1346_v54 = vpop.f32.mrf.mxu0  ;;  %v1829_v36 = vpop.f32.mrf.mxu1 }
 0x1b7   :  { %2633 = vst [vmem:[%s4302_s5] sm:$0xff] %v2632_v53   ;;  %v1537_v35 = vmax.f32 %v1346_v54, 0.0  ;;  %v2020_v9 = vmax.f32 %v1829_v36, 0.0  ;;  %v2119_v11 = vmax.f32 %v3840_v18, %v2069_v52 }
 0x1b8   :  { %v3165_v38 = vpop.f32.mrf.mxu0  ;;  %v3281_v61 = vpop.f32.mrf.mxu1 }
 0x1b9   :  { %v2070_v45 = vmax.f32 %v1537_v35, %v2020_v9 }
 0x1ba   :  { %v1351_v2 = vpop.f32.mrf.mxu0  ;;  %v1834_v62 = vpop.f32.mrf.mxu1 }
 0x1bb   :  { %v2120_v47 = vmax.f32 %v3848_v27, %v2070_v45  ;;  %v1538_v63 = vmax.f32 %v1351_v2, 0.0  ;;  %v2021_v6 = vmax.f32 %v1834_v62, 0.0 }
 0x1bc   :  { %v3168_v26 = vpop.f32.mrf.mxu0  ;;  %v3284_v33 = vpop.f32.mrf.mxu1 }
 0x1bd   :  { %v2637_v15 = vpack.c.bf16 %v2120_v47, %v2119_v11  ;;  %v2071_v36 = vmax.f32 %v1538_v63, %v2021_v6 }
 0x1be   :  { %v1354_v17 = vpop.f32.mrf.mxu0  ;;  %v1837_v0 = vpop.f32.mrf.mxu1 }
 0x1bf   :  { %2754 = vst [vmem:[%s4302_s5 + $0x8] sm:$0xff] %v2637_v15   ;;  %v1539_v21 = vmax.f32 %v1354_v17, 0.0  ;;  %v2022_v10 = vmax.f32 %v1837_v0, 0.0  ;;  %v2121_v27 = vmax.f32 %v3854_v34, %v2071_v36 }
 0x1c0   :  { %v3169_v39 = vpop.f32.mrf.mxu0  ;;  %v3285_v53 = vpop.f32.mrf.mxu1 }
 0x1c1   :  { %v2072_v54 = vmax.f32 %v1539_v21, %v2022_v10 }
 0x1c2   :  { %v1359_v18 = vpop.f32.mrf.mxu0  ;;  %v1842_v52 = vpop.f32.mrf.mxu1 }
 0x1c3   :  { %v2122_v35 = vmax.f32 %v3862_v43, %v2072_v54  ;;  %v1540_v9 = vmax.f32 %v1359_v18, 0.0  ;;  %v2023_v38 = vmax.f32 %v1842_v52, 0.0 }
 0x1c4   :  { %v3172_v61 = vpop.f32.mrf.mxu0  ;;  %v3288_v45 = vpop.f32.mrf.mxu1 }
 0x1c5   :  { %v2642_v2 = vpack.c.bf16 %v2122_v35, %v2121_v27  ;;  %v2073_v47 = vmax.f32 %v1540_v9, %v2023_v38 }
 0x1c6   :  { %v1362_v62 = vpop.f32.mrf.mxu0  ;;  %v1845_v11 = vpop.f32.mrf.mxu1 }
 0x1c7   :  { %2755 = vst [vmem:[%s4302_s5 + $0x10] sm:$0xff] %v2642_v2   ;;  %v1541_v63 = vmax.f32 %v1362_v62, 0.0  ;;  %v2024_v6 = vmax.f32 %v1845_v11, 0.0  ;;  %v2123_v43 = vmax.f32 %v3868_v50, %v2073_v47 }
 0x1c8   :  { %v3173_v26 = vpop.f32.mrf.mxu0  ;;  %v3289_v33 = vpop.f32.mrf.mxu1 }
 0x1c9   :  { %v2074_v15 = vmax.f32 %v1541_v63, %v2024_v6 }
 0x1ca   :  { %v1367_v34 = vpop.f32.mrf.mxu0  ;;  %v1850_v17 = vpop.f32.mrf.mxu1 }
 0x1cb   :  { %v2124_v0 = vmax.f32 %v3876_v59, %v2074_v15  ;;  %v1542_v36 = vmax.f32 %v1367_v34, 0.0  ;;  %v2025_v21 = vmax.f32 %v1850_v17, 0.0 }
 0x1cc   :  { %v3176_v10 = vpop.f32.mrf.mxu0  ;;  %v3292_v39 = vpop.f32.mrf.mxu1 }
 0x1cd   :  { %v2647_v53 = vpack.c.bf16 %v2124_v0, %v2123_v43  ;;  %v2075_v52 = vmax.f32 %v1542_v36, %v2025_v21 }
 0x1ce   :  { %v1370_v54 = vpop.f32.mrf.mxu0  ;;  %v1853_v18 = vpop.f32.mrf.mxu1 }
 0x1cf   :  { %2756 = vst [vmem:[%s4302_s5 + $0x18] sm:$0xff] %v2647_v53   ;;  %v1543_v27 = vmax.f32 %v1370_v54, 0.0  ;;  %v2026_v35 = vmax.f32 %v1853_v18, 0.0  ;;  %v2125_v59 = vmax.f32 %v3882_v4, %v2075_v52 }
 0x1d0   :  { %v3177_v9 = vpop.f32.mrf.mxu0  ;;  %v3293_v38 = vpop.f32.mrf.mxu1 }
 0x1d1   :  { %v2076_v61 = vmax.f32 %v1543_v27, %v2026_v35 }
 0x1d2   :  { %v1375_v50 = vpop.f32.mrf.mxu0  ;;  %v1858_v45 = vpop.f32.mrf.mxu1 }
 0x1d3   :  { %v2126_v2 = vmax.f32 %v3890_v14, %v2076_v61  ;;  %v1544_v62 = vmax.f32 %v1375_v50, 0.0  ;;  %v2027_v11 = vmax.f32 %v1858_v45, 0.0 }
 0x1d4   :  { %v3180_v47 = vpop.f32.mrf.mxu0  ;;  %v3296_v63 = vpop.f32.mrf.mxu1 }
 0x1d5   :  { %v2652_v6 = vpack.c.bf16 %v2126_v2, %v2125_v59  ;;  %v2077_v15 = vmax.f32 %v1544_v62, %v2027_v11 }
 0x1d6   :  { %v1378_v26 = vpop.f32.mrf.mxu0  ;;  %v1861_v33 = vpop.f32.mrf.mxu1 }
 0x1d7   :  { %2757 = vst [vmem:[%s4302_s5 + $0x20] sm:$0xff] %v2652_v6   ;;  %v1545_v34 = vmax.f32 %v1378_v26, 0.0  ;;  %v2028_v17 = vmax.f32 %v1861_v33, 0.0  ;;  %v2127_v14 = vmax.f32 %v3896_v22, %v2077_v15 }
 0x1d8   :  { %v3181_v43 = vpop.f32.mrf.mxu0  ;;  %v3297_v0 = vpop.f32.mrf.mxu1 }
 0x1d9   :  { %v2078_v36 = vmax.f32 %v1545_v34, %v2028_v17 }
 0x1da   :  { %v1383_v4 = vpop.f32.mrf.mxu0  ;;  %v1866_v21 = vpop.f32.mrf.mxu1 }
 0x1db   :  { %v2128_v10 = vmax.f32 %v3904_v32, %v2078_v36  ;;  %v1546_v39 = vmax.f32 %v1383_v4, 0.0  ;;  %v2029_v53 = vmax.f32 %v1866_v21, 0.0 }
 0x1dc   :  { %v3184_v54 = vpop.f32.mrf.mxu0  ;;  %v3300_v18 = vpop.f32.mrf.mxu1 }
 0x1dd   :  { %v2657_v52 = vpack.c.bf16 %v2128_v10, %v2127_v14  ;;  %v2079_v9 = vmax.f32 %v1546_v39, %v2029_v53 }
 0x1de   :  { %v1386_v27 = vpop.f32.mrf.mxu0  ;;  %v1869_v35 = vpop.f32.mrf.mxu1 }
 0x1df   :  { %2758 = vst [vmem:[%s4302_s5 + $0x28] sm:$0xff] %v2657_v52   ;;  %v1547_v38 = vmax.f32 %v1386_v27, 0.0  ;;  %v2030_v61 = vmax.f32 %v1869_v35, 0.0  ;;  %v2129_v32 = vmax.f32 %v3910_v40, %v2079_v9 }
 0x1e0   :  { %v3185_v50 = vpop.f32.mrf.mxu0  ;;  %v3301_v45 = vpop.f32.mrf.mxu1 }
 0x1e1   :  { %v2080_v59 = vmax.f32 %v1547_v38, %v2030_v61 }
 0x1e2   :  { %v1391_v22 = vpop.f32.mrf.mxu0  ;;  %v1874_v2 = vpop.f32.mrf.mxu1 }
 0x1e3   :  { %v2130_v62 = vmax.f32 %v3918_v51, %v2080_v59  ;;  %v1548_v11 = vmax.f32 %v1391_v22, 0.0  ;;  %v2031_v47 = vmax.f32 %v1874_v2, 0.0 }
 0x1e4   :  { %v3188_v63 = vpop.f32.mrf.mxu0  ;;  %v3304_v6 = vpop.f32.mrf.mxu1 }
 0x1e5   :  { %v2662_v26 = vpack.c.bf16 %v2130_v62, %v2129_v32  ;;  %v2081_v34 = vmax.f32 %v1548_v11, %v2031_v47 }
 0x1e6   :  { %v1394_v33 = vpop.f32.mrf.mxu0  ;;  %v1877_v15 = vpop.f32.mrf.mxu1 }
 0x1e7   :  { %2759 = vst [vmem:[%s4302_s5 + $0x30] sm:$0xff] %v2662_v26   ;;  %v1549_v17 = vmax.f32 %v1394_v33, 0.0  ;;  %v2032_v43 = vmax.f32 %v1877_v15, 0.0  ;;  %v2131_v51 = vmax.f32 %v3924_v58, %v2081_v34 }
 0x1e8   :  { %v3189_v0 = vpop.f32.mrf.mxu0  ;;  %v3305_v36 = vpop.f32.mrf.mxu1 }
 0x1e9   :  { %v2082_v4 = vmax.f32 %v1549_v17, %v2032_v43 }
 0x1ea   :  { %v1399_v40 = vpop.f32.mrf.mxu0  ;;  %v1882_v21 = vpop.f32.mrf.mxu1 }
 0x1eb   :  { %v2132_v14 = vmax.f32 %v3932_v7, %v2082_v4  ;;  %v1550_v10 = vmax.f32 %v1399_v40, 0.0  ;;  %v2033_v39 = vmax.f32 %v1882_v21, 0.0 }
 0x1ec   :  { %v3192_v53 = vpop.f32.mrf.mxu0  ;;  %v3308_v54 = vpop.f32.mrf.mxu1 }
 0x1ed   :  { %v2667_v18 = vpack.c.bf16 %v2132_v14, %v2131_v51  ;;  %v2083_v35 = vmax.f32 %v1550_v10, %v2033_v39 }
 0x1ee   :  { %v1402_v52 = vpop.f32.mrf.mxu0  ;;  %v1885_v27 = vpop.f32.mrf.mxu1 }
 0x1ef   :  { %2760 = vst [vmem:[%s4302_s5 + $0x38] sm:$0xff] %v2667_v18   ;;  %v1551_v9 = vmax.f32 %v1402_v52, 0.0  ;;  %v2034_v38 = vmax.f32 %v1885_v27, 0.0  ;;  %v2133_v7 = vmax.f32 %v3938_v16, %v2083_v35 }
 0x1f0   :  { %v3193_v61 = vpop.f32.mrf.mxu0  ;;  %v3309_v50 = vpop.f32.mrf.mxu1 }
 0x1f1   :  { %v2084_v45 = vmax.f32 %v1551_v9, %v2034_v38 }
 0x1f2   :  { %v1407_v58 = vpop.f32.mrf.mxu0  ;;  %v1890_v59 = vpop.f32.mrf.mxu1 }
 0x1f3   :  { %v2134_v22 = vmax.f32 %v3946_v28, %v2084_v45  ;;  %v1552_v2 = vmax.f32 %v1407_v58, 0.0  ;;  %v2035_v32 = vmax.f32 %v1890_v59, 0.0 }
 0x1f4   :  { %v3196_v62 = vpop.f32.mrf.mxu0  ;;  %v3312_v11 = vpop.f32.mrf.mxu1 }
 0x1f5   :  { %v2672_v47 = vpack.c.bf16 %v2134_v22, %v2133_v7  ;;  %v2085_v26 = vmax.f32 %v1552_v2, %v2035_v32 }
 0x1f6   :  { %v1410_v63 = vpop.f32.mrf.mxu0  ;;  %v1893_v6 = vpop.f32.mrf.mxu1 }
 0x1f7   :  { %2761 = vst [vmem:[%s4302_s5 + $0x40] sm:$0xff] %v2672_v47   ;;  %v1553_v33 = vmax.f32 %v1410_v63, 0.0  ;;  %v2036_v15 = vmax.f32 %v1893_v6, 0.0  ;;  %v2135_v28 = vmax.f32 %v3952_v37, %v2085_v26 }
 0x1f8   :  { %v3197_v34 = vpop.f32.mrf.mxu0  ;;  %v3313_v17 = vpop.f32.mrf.mxu1 }
 0x1f9   :  { %v2086_v43 = vmax.f32 %v1553_v33, %v2036_v15 }
 0x1fa   :  { %v1415_v16 = vpop.f32.mrf.mxu0  ;;  %v1898_v0 = vpop.f32.mrf.mxu1 }
 0x1fb   :  { %v2136_v36 = vmax.f32 %v3960_v48, %v2086_v43  ;;  %v1554_v4 = vmax.f32 %v1415_v16, 0.0  ;;  %v2037_v40 = vmax.f32 %v1898_v0, 0.0 }
 0x1fc   :  { %v3200_v21 = vpop.f32.mrf.mxu0  ;;  %v3316_v51 = vpop.f32.mrf.mxu1 }
 0x1fd   :  { %v2677_v14 = vpack.c.bf16 %v2136_v36, %v2135_v28  ;;  %v2087_v53 = vmax.f32 %v1554_v4, %v2037_v40 }
 0x1fe   :  { %v1418_v10 = vpop.f32.mrf.mxu0  ;;  %v1901_v39 = vpop.f32.mrf.mxu1 }
 0x1ff   :  { %2762 = vst [vmem:[%s4302_s5 + $0x48] sm:$0xff] %v2677_v14   ;;  %v1555_v54 = vmax.f32 %v1418_v10, 0.0  ;;  %v2038_v18 = vmax.f32 %v1901_v39, 0.0  ;;  %v2137_v48 = vmax.f32 %v3966_v57, %v2087_v53 }
 0x200   :  { %v3201_v52 = vpop.f32.mrf.mxu0  ;;  %v3317_v27 = vpop.f32.mrf.mxu1 }
 0x201   :  { %v2088_v35 = vmax.f32 %v1555_v54, %v2038_v18 }
 0x202   :  { %v1423_v37 = vpop.f32.mrf.mxu0  ;;  %v1906_v9 = vpop.f32.mrf.mxu1 }
 0x203   :  { %v2138_v38 = vmax.f32 %v3974_v8, %v2088_v35  ;;  %v1556_v61 = vmax.f32 %v1423_v37, 0.0  ;;  %v2039_v50 = vmax.f32 %v1906_v9, 0.0 }
 0x204   :  { %v3204_v45 = vpop.f32.mrf.mxu0  ;;  %v3320_v58 = vpop.f32.mrf.mxu1 }
 0x205   :  { %v2682_v59 = vpack.c.bf16 %v2138_v38, %v2137_v48  ;;  %v2089_v2 = vmax.f32 %v1556_v61, %v2039_v50 }
 0x206   :  { %v1426_v7 = vpop.f32.mrf.mxu0  ;;  %v1909_v22 = vpop.f32.mrf.mxu1 }
 0x207   :  { %2763 = vst [vmem:[%s4302_s5 + $0x50] sm:$0xff] %v2682_v59   ;;  %v1557_v32 = vmax.f32 %v1426_v7, 0.0  ;;  %v2040_v62 = vmax.f32 %v1909_v22, 0.0  ;;  %v2139_v8 = vmax.f32 %v3980_v19, %v2089_v2 }
 0x208   :  { %v3205_v11 = vpop.f32.mrf.mxu0  ;;  %v3321_v47 = vpop.f32.mrf.mxu1 }
 0x209   :  { %v2090_v63 = vmax.f32 %v1557_v32, %v2040_v62 }
 0x20a   :  { %v1431_v57 = vpop.f32.mrf.mxu0  ;;  %v1914_v6 = vpop.f32.mrf.mxu1 }
 0x20b   :  { %v2140_v26 = vmax.f32 %v3988_v31, %v2090_v63  ;;  %v1558_v33 = vmax.f32 %v1431_v57, 0.0  ;;  %v2041_v15 = vmax.f32 %v1914_v6, 0.0 }
 0x20c   :  { %v3208_v34 = vpop.f32.mrf.mxu0  ;;  %v3324_v17 = vpop.f32.mrf.mxu1 }
 0x20d   :  { %v2687_v43 = vpack.c.bf16 %v2140_v26, %v2139_v8  ;;  %v2091_v28 = vmax.f32 %v1558_v33, %v2041_v15 }
 0x20e   :  { %v1434_v16 = vpop.f32.mrf.mxu0  ;;  %v1917_v0 = vpop.f32.mrf.mxu1 }
 0x20f   :  { %2764 = vst [vmem:[%s4302_s5 + $0x58] sm:$0xff] %v2687_v43   ;;  %v1559_v36 = vmax.f32 %v1434_v16, 0.0  ;;  %v2042_v4 = vmax.f32 %v1917_v0, 0.0  ;;  %v2141_v31 = vmax.f32 %v3994_v42, %v2091_v28 }
 0x210   :  { %v3209_v40 = vpop.f32.mrf.mxu0  ;;  %v3325_v21 = vpop.f32.mrf.mxu1 }
 0x211   :  { %v2092_v51 = vmax.f32 %v1559_v36, %v2042_v4 }
 0x212   :  { %v1439_v19 = vpop.f32.mrf.mxu0  ;;  %v1922_v14 = vpop.f32.mrf.mxu1 }
 0x213   :  { %v2142_v10 = vmax.f32 %v4002_v55, %v2092_v51  ;;  %v1560_v39 = vmax.f32 %v1439_v19, 0.0  ;;  %v2043_v53 = vmax.f32 %v1922_v14, 0.0 }
 0x214   :  { %v3212_v54 = vpop.f32.mrf.mxu0  ;;  %v3328_v18 = vpop.f32.mrf.mxu1 }
 0x215   :  { %v2692_v52 = vpack.c.bf16 %v2142_v10, %v2141_v31  ;;  %v2093_v37 = vmax.f32 %v1560_v39, %v2043_v53 }
 0x216   :  { %v1442_v27 = vpop.f32.mrf.mxu0  ;;  %v1925_v35 = vpop.f32.mrf.mxu1 }
 0x217   :  { %2765 = vst [vmem:[%s4302_s5 + $0x60] sm:$0xff] %v2692_v52   ;;  %v1561_v9 = vmax.f32 %v1442_v27, 0.0  ;;  %v2044_v48 = vmax.f32 %v1925_v35, 0.0  ;;  %v2143_v55 = vmax.f32 %v4008_v3, %v2093_v37 }
 0x218   :  { %v3213_v38 = vpop.f32.mrf.mxu0  ;;  %v3329_v61 = vpop.f32.mrf.mxu1 }
 0x219   :  { %v2094_v50 = vmax.f32 %v1561_v9, %v2044_v48 }
 0x21a   :  { %v1447_v42 = vpop.f32.mrf.mxu0  ;;  %v1930_v45 = vpop.f32.mrf.mxu1 }
 0x21b   :  { %v2144_v58 = vmax.f32 %v4016_v20, %v2094_v50  ;;  %v1562_v59 = vmax.f32 %v1447_v42, 0.0  ;;  %v2045_v7 = vmax.f32 %v1930_v45, 0.0 }
 0x21c   :  { %v3216_v22 = vpop.f32.mrf.mxu0  ;;  %v3332_v2 = vpop.f32.mrf.mxu1 }
 0x21d   :  { %v2697_v32 = vpack.c.bf16 %v2144_v58, %v2143_v55  ;;  %v2095_v47 = vmax.f32 %v1562_v59, %v2045_v7 }
 0x21e   :  { %v1450_v62 = vpop.f32.mrf.mxu0  ;;  %v1933_v11 = vpop.f32.mrf.mxu1 }
 0x21f   :  { %2766 = vst [vmem:[%s4302_s5 + $0x68] sm:$0xff] %v2697_v32   ;;  %v1563_v63 = vmax.f32 %v1450_v62, 0.0  ;;  %v2046_v57 = vmax.f32 %v1933_v11, 0.0  ;;  %v2145_v20 = vmax.f32 %v4022_v30, %v2095_v47 }
 0x220   :  { %v3217_v6 = vpop.f32.mrf.mxu0  ;;  %v3333_v8 = vpop.f32.mrf.mxu1 }
 0x221   :  { %v2096_v26 = vmax.f32 %v1563_v63, %v2046_v57 }
 0x222   :  { %v1455_v3 = vpop.f32.mrf.mxu0  ;;  %v1938_v33 = vpop.f32.mrf.mxu1 }
 0x223   :  { %v2146_v15 = vmax.f32 %v4030_v46, %v2096_v26  ;;  %v1564_v34 = vmax.f32 %v1455_v3, 0.0  ;;  %v2047_v17 = vmax.f32 %v1938_v33, 0.0 }
 0x224   :  { %v3220_v43 = vpop.f32.mrf.mxu0  ;;  %v3336_v16 = vpop.f32.mrf.mxu1 }
 0x225   :  { %v2702_v0 = vpack.c.bf16 %v2146_v15, %v2145_v20  ;;  %v2097_v4 = vmax.f32 %v1564_v34, %v2047_v17 }
 0x226   :  { %v1458_v28 = vpop.f32.mrf.mxu0  ;;  %v1941_v36 = vpop.f32.mrf.mxu1 }
 0x227   :  { %2767 = vst [vmem:[%s4302_s5 + $0x70] sm:$0xff] %v2702_v0   ;;  %v1565_v40 = vmax.f32 %v1458_v28, 0.0  ;;  %v2048_v21 = vmax.f32 %v1941_v36, 0.0  ;;  %v2147_v46 = vmax.f32 %v4036_v60, %v2097_v4 }
 0x228   :  { %v3221_v51 = vpop.f32.mrf.mxu0  ;;  %v3337_v19 = vpop.f32.mrf.mxu1 }
 0x229   :  { %v2098_v14 = vmax.f32 %v1565_v40, %v2048_v21 }
 0x22a   :  { %v1463_v30 = vpop.f32.mrf.mxu0  ;;  %v1946_v31 = vpop.f32.mrf.mxu1 }
 0x22b   :  { %v2148_v10 = vmax.f32 %v4044_v12, %v2098_v14  ;;  %v1566_v39 = vmax.f32 %v1463_v30, 0.0  ;;  %v2049_v53 = vmax.f32 %v1946_v31, 0.0 }
 0x22c   :  { %v3224_v54 = vpop.f32.mrf.mxu0  ;;  %v3340_v18 = vpop.f32.mrf.mxu1 }
 0x22d   :  { %v2707_v52 = vpack.c.bf16 %v2148_v10, %v2147_v46  ;;  %v2099_v37 = vmax.f32 %v1566_v39, %v2049_v53 }
 0x22e   :  { %v1466_v27 = vpop.f32.mrf.mxu0  ;;  %v1949_v35 = vpop.f32.mrf.mxu1 }
 0x22f   :  { %2768 = vst [vmem:[%s4302_s5 + $0x78] sm:$0xff] %v2707_v52   ;;  %v1567_v9 = vmax.f32 %v1466_v27, 0.0  ;;  %v2050_v48 = vmax.f32 %v1949_v35, 0.0  ;;  %v2149_v12 = vmax.f32 %v4050_v25, %v2099_v37 }
 0x230   :  { %v3225_v38 = vpop.f32.mrf.mxu0  ;;  %v3341_v61 = vpop.f32.mrf.mxu1 }
 0x231   :  { %v2100_v50 = vmax.f32 %v1567_v9, %v2050_v48 }
 0x232   :  { %v1471_v60 = vpop.f32.mrf.mxu0  ;;  %v1954_v42 = vpop.f32.mrf.mxu1 }
 0x233   :  { %v2150_v45 = vmax.f32 %v4058_v44, %v2100_v50  ;;  %v1568_v55 = vmax.f32 %v1471_v60, 0.0  ;;  %v2051_v58 = vmax.f32 %v1954_v42, 0.0 }
 0x234   :  { %v3228_v59 = vpop.f32.mrf.mxu0  ;;  %v3344_v7 = vpop.f32.mrf.mxu1 }
 0x235   :  { %v2712_v22 = vpack.c.bf16 %v2150_v45, %v2149_v12  ;;  %v2101_v62 = vmax.f32 %v1568_v55, %v2051_v58 }
 0x236   :  { %v1474_v2 = vpop.f32.mrf.mxu0  ;;  %v1957_v32 = vpop.f32.mrf.mxu1 }
 0x237   :  { %2769 = vst [vmem:[%s4302_s5 + $0x80] sm:$0xff] %v2712_v22   ;;  %v1569_v11 = vmax.f32 %v1474_v2, 0.0  ;;  %v2052_v47 = vmax.f32 %v1957_v32, 0.0  ;;  %v2151_v44 = vmax.f32 %v4064_v56, %v2101_v62 }
 0x238   :  { %v3229_v63 = vpop.f32.mrf.mxu0  ;;  %v3345_v57 = vpop.f32.mrf.mxu1 }
 0x239   :  { %v2102_v6 = vmax.f32 %v1569_v11, %v2052_v47 }
 0x23a   :  { %v1479_v25 = vpop.f32.mrf.mxu0  ;;  %v1962_v8 = vpop.f32.mrf.mxu1 }
 0x23b   :  { %v2152_v26 = vmax.f32 %v4072_v13, %v2102_v6  ;;  %v1570_v3 = vmax.f32 %v1479_v25, 0.0  ;;  %v2053_v33 = vmax.f32 %v1962_v8, 0.0 }
 0x23c   :  { %v3232_v20 = vpop.f32.mrf.mxu0  ;;  %v3348_v15 = vpop.f32.mrf.mxu1 }
 0x23d   :  { %v2717_v34 = vpack.c.bf16 %v2152_v26, %v2151_v44  ;;  %v2103_v16 = vmax.f32 %v1570_v3, %v2053_v33 }
 0x23e   :  { %v1482_v17 = vpop.f32.mrf.mxu0  ;;  %v1965_v43 = vpop.f32.mrf.mxu1 }
 0x23f   :  { %2770 = vst [vmem:[%s4302_s5 + $0x88] sm:$0xff] %v2717_v34   ;;  %v1571_v0 = vmax.f32 %v1482_v17, 0.0  ;;  %v2054_v28 = vmax.f32 %v1965_v43, 0.0  ;;  %v2153_v13 = vmax.f32 %v4078_v29, %v2103_v16  ;;  %v4310_v34 = vld [vmem:[#allocation2_spill] sm:$0xff] }
 0x240   :  { %v3233_v36 = vpop.f32.mrf.mxu0  ;;  %v3349_v4 = vpop.f32.mrf.mxu1 }
 0x241   :  { %v2104_v40 = vmax.f32 %v1571_v0, %v2054_v28 }
 0x242   :  { %v1487_v56 = vpop.f32.mrf.mxu0  ;;  %v1970_v21 = vpop.f32.mrf.mxu1 }
 0x243   :  { %v2154_v51 = vmax.f32 %v4086_v49, %v2104_v40  ;;  %v1572_v19 = vmax.f32 %v1487_v56, 0.0  ;;  %v2055_v14 = vmax.f32 %v1970_v21, 0.0 }
 0x244   :  { %v3236_v30 = vpop.f32.mrf.mxu0  ;;  %v3352_v31 = vpop.f32.mrf.mxu1 }
 0x245   :  { %v2722_v46 = vpack.c.bf16 %v2154_v51, %v2153_v13  ;;  %v2105_v53 = vmax.f32 %v1572_v19, %v2055_v14  ;;  %v4311_v31 = vld [vmem:[#allocation3_spill] sm:$0xff] }
 0x246   :  { %v1490_v10 = vpop.f32.mrf.mxu0  ;;  %v1973_v39 = vpop.f32.mrf.mxu1 }
 0x247   :  { %2771 = vst [vmem:[%s4302_s5 + $0x90] sm:$0xff] %v2722_v46   ;;  %v1573_v54 = vmax.f32 %v1490_v10, 0.0  ;;  %v2056_v18 = vmax.f32 %v1973_v39, 0.0  ;;  %v2155_v49 = vmax.f32 %v4092_v1, %v2105_v53  ;;  %v4312_v10 = vld [vmem:[#allocation4_spill] sm:$0xff] }
 0x248   :  { %v3237_v52 = vpop.f32.mrf.mxu0  ;;  %v3353_v27 = vpop.f32.mrf.mxu1 }
 0x249   :  { %v2106_v35 = vmax.f32 %v1573_v54, %v2056_v18 }
 0x24a   :  { %v1495_v29 = vpop.f32.mrf.mxu0  ;;  %v1978_v37 = vpop.f32.mrf.mxu1 }
 0x24b   :  { %v2156_v9 = vmax.f32 %v4100_v24, %v2106_v35  ;;  %v1574_v48 = vmax.f32 %v1495_v29, 0.0  ;;  %v2057_v38 = vmax.f32 %v1978_v37, 0.0 }
 0x24c   :  { %v3240_v61 = vpop.f32.mrf.mxu0  ;;  %v3356_v50 = vpop.f32.mrf.mxu1 }
 0x24d   :  { %v2727_v60 = vpack.c.bf16 %v2156_v9, %v2155_v49  ;;  %v2107_v45 = vmax.f32 %v1574_v48, %v2057_v38 }
 0x24e   :  { %v1498_v42 = vpop.f32.mrf.mxu0  ;;  %v1981_v12 = vpop.f32.mrf.mxu1 }
 0x24f   :  { %2772 = vst [vmem:[%s4302_s5 + $0x98] sm:$0xff] %v2727_v60   ;;  %v1575_v55 = vmax.f32 %v1498_v42, 0.0  ;;  %v2058_v58 = vmax.f32 %v1981_v12, 0.0  ;;  %v2157_v24 = vmax.f32 %v4106_v41, %v2107_v45  ;;  %v4313_v42 = vld [vmem:[#allocation5_spill] sm:$0xff]  ;;  %v4314_v45 = vld [vmem:[#allocation6_spill] sm:$0xff] }
 0x250   :  { %v3241_v59 = vpop.f32.mrf.mxu0  ;;  %v3357_v7 = vpop.f32.mrf.mxu1 }
 0x251   :  { %v2108_v22 = vmax.f32 %v1575_v55, %v2058_v58 }
 0x252   :  { %v1503_v1 = vpop.f32.mrf.mxu0  ;;  %v1986_v2 = vpop.f32.mrf.mxu1 }
 0x253   :  { %v2158_v32 = vmax.f32 %v4114_v5, %v2108_v22  ;;  %v1576_v62 = vmax.f32 %v1503_v1, 0.0  ;;  %v2059_v11 = vmax.f32 %v1986_v2, 0.0 }
 0x254   :  { %v3244_v47 = vpop.f32.mrf.mxu0  ;;  %v3360_v63 = vpop.f32.mrf.mxu1 }
 0x255   :  { %v2732_v57 = vpack.c.bf16 %v2158_v32, %v2157_v24  ;;  %v2109_v8 = vmax.f32 %v1576_v62, %v2059_v11 }
 0x256   :  { %v1506_v6 = vpop.f32.mrf.mxu0  ;;  %v1989_v25 = vpop.f32.mrf.mxu1 }
 0x257   :  { %2773 = vst [vmem:[%s4302_s5 + $0xa0] sm:$0xff] %v2732_v57   ;;  %v1577_v44 = vmax.f32 %v1506_v6, 0.0  ;;  %v2060_v26 = vmax.f32 %v1989_v25, 0.0  ;;  %v2159_v5 = vmax.f32 %v4120_v23, %v2109_v8  ;;  %v4315_v6 = vld [vmem:[#allocation7_spill] sm:$0xff]  ;;  %v4316_v8 = vld [vmem:[#allocation8_spill] sm:$0xff] }
 0x258   :  { %v3245_v3 = vpop.f32.mrf.mxu0  ;;  %v3361_v33 = vpop.f32.mrf.mxu1 }
 0x259   :  { %v2110_v20 = vmax.f32 %v1577_v44, %v2060_v26 }
 0x25a   :  { %v1511_v41 = vpop.f32.mrf.mxu0  ;;  %v1994_v15 = vpop.f32.mrf.mxu1 }
 0x25b   :  { %v2160_v17 = vmax.f32 %v4310_v34, %v2110_v20  ;;  %v1578_v43 = vmax.f32 %v1511_v41, 0.0  ;;  %v2061_v16 = vmax.f32 %v1994_v15, 0.0 }
 0x25c   :  { %v3248_v0 = vpop.f32.mrf.mxu0  ;;  %v3364_v28 = vpop.f32.mrf.mxu1 }
 0x25d   :  { %v2737_v36 = vpack.c.bf16 %v2160_v17, %v2159_v5  ;;  %v2111_v56 = vmax.f32 %v1578_v43, %v2061_v16 }
 0x25e   :  { %v1514_v4 = vpop.f32.mrf.mxu0  ;;  %v1997_v40 = vpop.f32.mrf.mxu1 }
 0x25f   :  { %2774 = vst [vmem:[%s4302_s5 + $0xa8] sm:$0xff] %v2737_v36   ;;  %v1579_v21 = vmax.f32 %v1514_v4, 0.0  ;;  %v2062_v13 = vmax.f32 %v1997_v40, 0.0  ;;  %v2161_v46 = vmax.f32 %v4311_v31, %v2111_v56 }
 0x260   :  { %v3249_v51 = vpop.f32.mrf.mxu0  ;;  %v3365_v19 = vpop.f32.mrf.mxu1 }
 0x261   :  { %v2112_v14 = vmax.f32 %v1579_v21, %v2062_v13 }
 0x262   :  { %v1519_v23 = vpop.f32.mrf.mxu0  ;;  %v2002_v30 = vpop.f32.mrf.mxu1 }
 0x263   :  { %v2162_v39 = vmax.f32 %v4312_v10, %v2112_v14  ;;  %v1580_v53 = vmax.f32 %v1519_v23, 0.0  ;;  %v2063_v54 = vmax.f32 %v2002_v30, 0.0 }
 0x264   :  { %v3252_v18 = vpop.f32.mrf.mxu0  ;;  %v3368_v52 = vpop.f32.mrf.mxu1 }
 0x265   :  { %v2742_v27 = vpack.c.bf16 %v2162_v39, %v2161_v46  ;;  %v2113_v37 = vmax.f32 %v1580_v53, %v2063_v54 }
 0x266   :  { %v1522_v35 = vpop.f32.mrf.mxu0  ;;  %v2005_v29 = vpop.f32.mrf.mxu1 }
 0x267   :  { %2775 = vst [vmem:[%s4302_s5 + $0xb0] sm:$0xff] %v2742_v27   ;;  %v1581_v49 = vmax.f32 %v1522_v35, 0.0  ;;  %v2064_v9 = vmax.f32 %v2005_v29, 0.0  ;;  %v2163_v12 = vmax.f32 %v4313_v42, %v2113_v37 }
 0x268   :  { %v3253_v48 = vpop.f32.mrf.mxu0  ;;  %v3369_v38 = vpop.f32.mrf.mxu1 }
 0x269   :  { %v2114_v61 = vmax.f32 %v1581_v49, %v2064_v9 }
 0x26a   :  { %v1527_v50 = vpop.f32.mrf.mxu0  ;;  %v2010_v60 = vpop.f32.mrf.mxu1 }
 0x26b   :  { %v2164_v55 = vmax.f32 %v4314_v45, %v2114_v61  ;;  %v1582_v58 = vmax.f32 %v1527_v50, 0.0  ;;  %v2065_v59 = vmax.f32 %v2010_v60, 0.0 }
 0x26c   :  { %v3256_v7 = vpop.f32.mrf.mxu0  ;;  %v3372_v22 = vpop.f32.mrf.mxu1 }
 0x26d   :  { %v2747_v1 = vpack.c.bf16 %v2164_v55, %v2163_v12  ;;  %v2115_v32 = vmax.f32 %v1582_v58, %v2065_v59 }
 0x26e   :  { %v1530_v2 = vpop.f32.mrf.mxu0  ;;  %v2013_v24 = vpop.f32.mrf.mxu1 }
 0x26f   :  { %2776 = vst [vmem:[%s4302_s5 + $0xb8] sm:$0xff] %v2747_v1   ;;  %v1583_v62 = vmax.f32 %v1530_v2, 0.0  ;;  %v2066_v11 = vmax.f32 %v2013_v24, 0.0  ;;  %v2165_v25 = vmax.f32 %v4315_v6, %v2115_v32 }
 0x270   :  { %v3257_v47 = vpop.f32.mrf.mxu0  ;;  %v3373_v63 = vpop.f32.mrf.mxu1 }
 0x271   :  { %v2116_v57 = vmax.f32 %v1583_v62, %v2066_v11 }
 0x273   :  { %v2166_v44 = vmax.f32 %v4316_v8, %v2116_v57 }
 0x275   :  { %v2752_v26 = vpack.c.bf16 %v2166_v44, %v2165_v25 }
 0x277   :  { %2777 = vst [vmem:[%s4302_s5 + $0xc0] sm:$0xff] %v2752_v26  }

// kernel: _lambda_.4
= control target key start
LH: loop header
LB: loop body
LE: loop exit
PB: predicated region body
PF: predicated region fallthrough
CT: control target
= control target key end

     0   :  { %s1330_s4 = inlined_call_operand.vmem [shape: bf16[256,128], index: 4, kind: input, shape index: {}]   ;;  %s1331_s0 = inlined_call_operand.vmem [shape: bf16[64,256], index: 0, kind: input, shape index: {}]   ;;  %s1332_s1 = inlined_call_operand.vmem [shape: bf16[64,256], index: 1, kind: input, shape index: {}]   ;;  %s1333_s2 = inlined_call_operand.vmem [shape: bf16[64,256], index: 2, kind: input, shape index: {}]   ;;  %s1334_s3 = inlined_call_operand.vmem [shape: bf16[64,256], index: 3, kind: input, shape index: {}]   ;;  %s1335_s5 = inlined_call_operand.vmem [shape: bf16[64,128], index: 5, kind: output, shape index: {}]  }
   0x1   :  { %v948_v0 = vld [vmem:[%s1330_s4 + $0x78] sm:$0xff]   ;;  %v950_v2 = vld [vmem:[%s1330_s4 + $0x70] sm:$0xff]   ;;  %v1063_v4 = vld [vmem:[%s1330_s4 + $0x68] sm:$0xff]  }
   0x2   :  { %v1048_v1 = vld [vmem:[%s1330_s4 + $0x38] sm:$0xff]   ;;  %788 = vmatprep.subr.bf16.mxu0 %v948_v0  ;;  %828 = vmatprep.subr.bf16.mxu1 %v948_v0  ;;  %v1058_v3 = vld [vmem:[%s1330_s4 + $0x30] sm:$0xff]   ;;  %v1070_v5 = vld [vmem:[%s1330_s4 + $0x28] sm:$0xff]  }
   0x3   :  { %789 = vmatpush3.bf16.msra.mxu0 %v1048_v1  ;;  %829 = vmatpush3.bf16.msra.mxu1 %v1048_v1  ;;  %v1077_v6 = vld [vmem:[%s1330_s4 + $0x60] sm:$0xff]   ;;  %v1091_v8 = vld [vmem:[%s1330_s4 + $0x58] sm:$0xff]   ;;  %v1105_v10 = vld [vmem:[%s1330_s4 + $0x50] sm:$0xff]  }
   0x4   :  { %790 = vmatprep.subr.bf16.mxu0 %v950_v2  ;;  %830 = vmatprep.subr.bf16.mxu1 %v950_v2  ;;  %v1084_v7 = vld [vmem:[%s1330_s4 + $0x20] sm:$0xff]   ;;  %v1098_v9 = vld [vmem:[%s1330_s4 + $0x18] sm:$0xff]   ;;  %v1118_v13 = vld [vmem:[%s1330_s4 + $0x10] sm:$0xff]  }
   0x5   :  { %v966_v11 = vld [vmem:[%s1331_s0 + $0x4] ss:$8 sps:$4 sm:$0xff]   ;;  %v964_v18 = vld [vmem:[%s1331_s0] ss:$8 sps:$4 sm:$0xff]   ;;  %v970_v20 = vld [vmem:[%s1331_s0 + $0x14] ss:$8 sps:$4 sm:$0xff]  }
   0x6   :  { %v969_v12 = vld [vmem:[%s1332_s1 + $0x4] ss:$8 sps:$4 sm:$0xff]   ;;  %229 = vmatprep.mubr.bf16.mxu0 %v966_v11  ;;  %v967_v19 = vld [vmem:[%s1332_s1] ss:$8 sps:$4 sm:$0xff]   ;;  %v972_v21 = vld [vmem:[%s1332_s1 + $0x14] ss:$8 sps:$4 sm:$0xff]  }
   0x7   :  { %791 = vmatpush3.bf16.msra.mxu0 %v1058_v3  ;;  %831 = vmatpush3.bf16.msra.mxu1 %v1058_v3  ;;  %v1125_v14 = vld [vmem:[%s1330_s4 + $0x48] sm:$0xff]   ;;  %v1139_v16 = vld [vmem:[%s1330_s4 + $0x40] sm:$0xff]   ;;  %v974_v22 = vld [vmem:[%s1331_s0 + $0x10] ss:$8 sps:$4 sm:$0xff]  }
   0x8   :  { %792 = vmatprep.subr.bf16.mxu0 %v1063_v4  ;;  %832 = vmatprep.subr.bf16.mxu1 %v1063_v4  ;;  %v1132_v15 = vld [vmem:[%s1330_s4 + $0x8] sm:$0xff]   ;;  %v1146_v17 = vld [vmem:[%s1330_s4] sm:$0xff]   ;;  %v975_v23 = vld [vmem:[%s1332_s1 + $0x10] ss:$8 sps:$4 sm:$0xff]  }
   0x9   :  { %350 = vmatprep.mubr.bf16.mxu1 %v969_v12  ;;  %v976_v24 = vld [vmem:[%s1331_s0 + $0x24] ss:$8 sps:$4 sm:$0xff]   ;;  %v980_v26 = vld [vmem:[%s1331_s0 + $0x20] ss:$8 sps:$4 sm:$0xff]   ;;  %v982_v28 = vld [vmem:[%s1331_s0 + $0x34] ss:$8 sps:$4 sm:$0xff]  }
   0xa   :  { %v978_v25 = vld [vmem:[%s1332_s1 + $0x24] ss:$8 sps:$4 sm:$0xff]   ;;  %v981_v27 = vld [vmem:[%s1332_s1 + $0x20] ss:$8 sps:$4 sm:$0xff]   ;;  %v984_v29 = vld [vmem:[%s1332_s1 + $0x34] ss:$8 sps:$4 sm:$0xff]  }
   0xb   :  { %793 = vmatpush3.bf16.msra.mxu0 %v1070_v5  ;;  %833 = vmatpush3.bf16.msra.mxu1 %v1070_v5  ;;  %v986_v30 = vld [vmem:[%s1331_s0 + $0x30] ss:$8 sps:$4 sm:$0xff]   ;;  %v990_v32 = vld [vmem:[%s1333_s2 + $0x4] ss:$8 sps:$4 sm:$0xff]   ;;  %v988_v34 = vld [vmem:[%s1333_s2] ss:$8 sps:$4 sm:$0xff]  }
   0xc   :  { %794 = vmatprep.subr.bf16.mxu0 %v1077_v6  ;;  %834 = vmatprep.subr.bf16.mxu1 %v1077_v6  ;;  %v987_v31 = vld [vmem:[%s1332_s1 + $0x30] ss:$8 sps:$4 sm:$0xff]   ;;  %v993_v33 = vld [vmem:[%s1334_s3 + $0x4] ss:$8 sps:$4 sm:$0xff]   ;;  %v991_v35 = vld [vmem:[%s1334_s3] ss:$8 sps:$4 sm:$0xff]  }
   0xd   :  { %v994_v36 = vld [vmem:[%s1333_s2 + $0x14] ss:$8 sps:$4 sm:$0xff]   ;;  %v998_v38 = vld [vmem:[%s1333_s2 + $0x10] ss:$8 sps:$4 sm:$0xff]   ;;  %v1000_v40 = vld [vmem:[%s1333_s2 + $0x24] ss:$8 sps:$4 sm:$0xff]  }
   0xe   :  { %v996_v37 = vld [vmem:[%s1334_s3 + $0x14] ss:$8 sps:$4 sm:$0xff]   ;;  %v999_v39 = vld [vmem:[%s1334_s3 + $0x10] ss:$8 sps:$4 sm:$0xff]   ;;  %v1002_v41 = vld [vmem:[%s1334_s3 + $0x24] ss:$8 sps:$4 sm:$0xff]  }
   0xf   :  { %795 = vmatpush3.bf16.msra.mxu0 %v1084_v7  ;;  %835 = vmatpush3.bf16.msra.mxu1 %v1084_v7  ;;  %v1004_v42 = vld [vmem:[%s1333_s2 + $0x20] ss:$8 sps:$4 sm:$0xff]   ;;  %v1006_v44 = vld [vmem:[%s1333_s2 + $0x34] ss:$8 sps:$4 sm:$0xff]   ;;  %v1010_v46 = vld [vmem:[%s1333_s2 + $0x30] ss:$8 sps:$4 sm:$0xff]  }
  0x10   :  { %796 = vmatprep.subr.bf16.mxu0 %v1091_v8  ;;  %836 = vmatprep.subr.bf16.mxu1 %v1091_v8  ;;  %v1005_v43 = vld [vmem:[%s1334_s3 + $0x20] ss:$8 sps:$4 sm:$0xff]   ;;  %v1008_v45 = vld [vmem:[%s1334_s3 + $0x34] ss:$8 sps:$4 sm:$0xff]   ;;  %v1011_v47 = vld [vmem:[%s1334_s3 + $0x30] ss:$8 sps:$4 sm:$0xff]  }
  0x13   :  { %797 = vmatpush3.bf16.msra.mxu0 %v1098_v9  ;;  %837 = vmatpush3.bf16.msra.mxu1 %v1098_v9 }
  0x14   :  { %798 = vmatprep.subr.bf16.mxu0 %v1105_v10  ;;  %838 = vmatprep.subr.bf16.mxu1 %v1105_v10 }
  0x17   :  { %799 = vmatpush3.bf16.msra.mxu0 %v1118_v13  ;;  %839 = vmatpush3.bf16.msra.mxu1 %v1118_v13 }
  0x18   :  { %800 = vmatprep.subr.bf16.mxu0 %v1125_v14  ;;  %840 = vmatprep.subr.bf16.mxu1 %v1125_v14 }
  0x1b   :  { %801 = vmatpush3.bf16.msra.mxu0 %v1132_v15  ;;  %841 = vmatpush3.bf16.msra.mxu1 %v1132_v15 }
  0x1c   :  { %802 = vmatprep.subr.bf16.mxu0 %v1139_v16  ;;  %842 = vmatprep.subr.bf16.mxu1 %v1139_v16 }
  0x1f   :  { %803 = vmatpush3.bf16.msra.mxu0 %v1146_v17  ;;  %843 = vmatpush3.bf16.msra.mxu1 %v1146_v17 }
  0x20   :  { %868 = vmatprep.subr.bf16.mxu0 %v948_v0  ;;  %908 = vmatprep.subr.bf16.mxu1 %v948_v0 }
  0x22   :  { %230 = vmatmul.mubr.bf16.vlgmr.msra.gmra.mxu0 %v964_v18  ;;  %351 = vmatmul.mubr.bf16.vlgmr.msra.gmra.mxu1 %v967_v19 }
  0x23   :  { %869 = vmatpush3.bf16.msra.mxu0 %v1048_v1  ;;  %909 = vmatpush3.bf16.msra.mxu1 %v1048_v1 }
  0x24   :  { %870 = vmatprep.subr.bf16.mxu0 %v950_v2  ;;  %910 = vmatprep.subr.bf16.mxu1 %v950_v2 }
  0x25   :  { %237 = vmatprep.mubr.bf16.mxu0 %v970_v20  ;;  %358 = vmatprep.mubr.bf16.mxu1 %v972_v21 }
  0x27   :  { %871 = vmatpush3.bf16.msra.mxu0 %v1058_v3  ;;  %911 = vmatpush3.bf16.msra.mxu1 %v1058_v3 }
  0x28   :  { %872 = vmatprep.subr.bf16.mxu0 %v1063_v4  ;;  %912 = vmatprep.subr.bf16.mxu1 %v1063_v4 }
  0x2a   :  { %238 = vmatmul.mubr.bf16.gmra.mxu0 %v974_v22  ;;  %359 = vmatmul.mubr.bf16.gmra.mxu1 %v975_v23 }
  0x2b   :  { %873 = vmatpush3.bf16.msra.mxu0 %v1070_v5  ;;  %913 = vmatpush3.bf16.msra.mxu1 %v1070_v5 }
  0x2c   :  { %874 = vmatprep.subr.bf16.mxu0 %v1077_v6  ;;  %914 = vmatprep.subr.bf16.mxu1 %v1077_v6 }
  0x2d   :  { %245 = vmatprep.mubr.bf16.mxu0 %v976_v24  ;;  %366 = vmatprep.mubr.bf16.mxu1 %v978_v25 }
  0x2f   :  { %875 = vmatpush3.bf16.msra.mxu0 %v1084_v7  ;;  %915 = vmatpush3.bf16.msra.mxu1 %v1084_v7 }
  0x30   :  { %876 = vmatprep.subr.bf16.mxu0 %v1091_v8  ;;  %916 = vmatprep.subr.bf16.mxu1 %v1091_v8 }
  0x32   :  { %246 = vmatmul.mubr.bf16.gmra.mxu0 %v980_v26  ;;  %367 = vmatmul.mubr.bf16.gmra.mxu1 %v981_v27 }
  0x33   :  { %877 = vmatpush3.bf16.msra.mxu0 %v1098_v9  ;;  %917 = vmatpush3.bf16.msra.mxu1 %v1098_v9 }
  0x34   :  { %878 = vmatprep.subr.bf16.mxu0 %v1105_v10  ;;  %918 = vmatprep.subr.bf16.mxu1 %v1105_v10 }
  0x35   :  { %253 = vmatprep.mubr.bf16.mxu0 %v982_v28  ;;  %374 = vmatprep.mubr.bf16.mxu1 %v984_v29 }
  0x37   :  { %879 = vmatpush3.bf16.msra.mxu0 %v1118_v13  ;;  %919 = vmatpush3.bf16.msra.mxu1 %v1118_v13 }
  0x38   :  { %880 = vmatprep.subr.bf16.mxu0 %v1125_v14  ;;  %920 = vmatprep.subr.bf16.mxu1 %v1125_v14 }
  0x3a   :  { %254 = vmatmul.mubr.bf16.gmra.mxu0 %v986_v30  ;;  %375 = vmatmul.mubr.bf16.gmra.mxu1 %v987_v31 }
  0x3b   :  { %881 = vmatpush3.bf16.msra.mxu0 %v1132_v15  ;;  %921 = vmatpush3.bf16.msra.mxu1 %v1132_v15 }
  0x3c   :  { %882 = vmatprep.subr.bf16.mxu0 %v1139_v16  ;;  %922 = vmatprep.subr.bf16.mxu1 %v1139_v16 }
  0x3d   :  { %479 = vmatprep.mubr.bf16.mxu0 %v990_v32  ;;  %600 = vmatprep.mubr.bf16.mxu1 %v993_v33 }
  0x3f   :  { %883 = vmatpush3.bf16.msra.mxu0 %v1146_v17  ;;  %923 = vmatpush3.bf16.msra.mxu1 %v1146_v17 }
  0x42   :  { %480 = vmatmul.mubr.bf16.vlgmr.msra.gmra.mxu0 %v988_v34  ;;  %601 = vmatmul.mubr.bf16.vlgmr.msra.gmra.mxu1 %v991_v35 }
  0x43   :  { %487 = vmatprep.mubr.bf16.mxu0 %v994_v36  ;;  %608 = vmatprep.mubr.bf16.mxu1 %v996_v37 }
  0x4a   :  { %488 = vmatmul.mubr.bf16.gmra.mxu0 %v998_v38  ;;  %609 = vmatmul.mubr.bf16.gmra.mxu1 %v999_v39 }
  0x4b   :  { %495 = vmatprep.mubr.bf16.mxu0 %v1000_v40  ;;  %616 = vmatprep.mubr.bf16.mxu1 %v1002_v41 }
  0x52   :  { %496 = vmatmul.mubr.bf16.gmra.mxu0 %v1004_v42  ;;  %617 = vmatmul.mubr.bf16.gmra.mxu1 %v1005_v43 }
  0x53   :  { %503 = vmatprep.mubr.bf16.mxu0 %v1006_v44  ;;  %624 = vmatprep.mubr.bf16.mxu1 %v1008_v45 }
  0x5a   :  { %504 = vmatmul.mubr.bf16.gmra.mxu0 %v1010_v46  ;;  %625 = vmatmul.mubr.bf16.gmra.mxu1 %v1011_v47 }
  0xe2   :  { %v804_v48 = vpop.f32.mrf.mxu0  ;;  %v844_v49 = vpop.f32.mrf.mxu1 }
  0xe4   :  { %v805_v50 = vpop.f32.mrf.mxu0  ;;  %v845_v51 = vpop.f32.mrf.mxu1 }
  0xe5   :  { %v806_v18 = vadd.f32 %v805_v50, %v804_v48  ;;  %v846_v19 = vadd.f32 %v845_v51, %v844_v49 }
  0xe6   :  { %v807_v52 = vpop.f32.mrf.mxu0  ;;  %v847_v53 = vpop.f32.mrf.mxu1 }
  0xe7   :  { %v262_v28 = vmax.f32 %v806_v18, 0.0  ;;  %v383_v29 = vmax.f32 %v846_v19, 0.0 }
  0xe8   :  { %v808_v54 = vpop.f32.mrf.mxu0  ;;  %v848_v55 = vpop.f32.mrf.mxu1 }
  0xe9   :  { %v809_v20 = vadd.f32 %v808_v54, %v807_v52  ;;  %v849_v21 = vadd.f32 %v848_v55, %v847_v53  ;;  %v391_v40 = vmax.f32 %v262_v28, %v383_v29 }
  0xea   :  { %v810_v56 = vpop.f32.mrf.mxu0  ;;  %v850_v57 = vpop.f32.mrf.mxu1 }
  0xeb   :  { %v263_v32 = vmax.f32 %v809_v20, 0.0  ;;  %v384_v33 = vmax.f32 %v849_v21, 0.0 }
  0xec   :  { %v811_v58 = vpop.f32.mrf.mxu0  ;;  %v851_v59 = vpop.f32.mrf.mxu1 }
  0xed   :  { %v392_v44 = vmax.f32 %v263_v32, %v384_v33  ;;  %v812_v45 = vadd.f32 %v811_v58, %v810_v56  ;;  %v852_v46 = vadd.f32 %v851_v59, %v850_v57 }
  0xee   :  { %v813_v60 = vpop.f32.mrf.mxu0  ;;  %v853_v61 = vpop.f32.mrf.mxu1 }
  0xef   :  { %v264_v20 = vmax.f32 %v812_v45, 0.0  ;;  %v385_v21 = vmax.f32 %v852_v46, 0.0 }
  0xf0   :  { %v814_v62 = vpop.f32.mrf.mxu0  ;;  %v854_v63 = vpop.f32.mrf.mxu1 }
  0xf1   :  { %v815_v47 = vadd.f32 %v814_v62, %v813_v60  ;;  %v855_v50 = vadd.f32 %v854_v63, %v853_v61  ;;  %v393_v28 = vmax.f32 %v264_v20, %v385_v21 }
  0xf2   :  { %v1270_v0 = vpop.f32.mrf.mxu0  ;;  %v1272_v1 = vpop.f32.mrf.mxu1 }
  0xf3   :  { %v386_v56 = vmax.f32 %v855_v50, 0.0 }
  0xf4   :  { %v1274_v2 = vpop.f32.mrf.mxu0  ;;  %v1276_v3 = vpop.f32.mrf.mxu1 }
  0xf5   :  { %v818_v60 = vadd.f32 %v1274_v2, %v1270_v0  ;;  %v858_v61 = vadd.f32 %v1276_v3, %v1272_v1 }
  0xf6   :  { %v1278_v4 = vpop.f32.mrf.mxu0  ;;  %v1280_v5 = vpop.f32.mrf.mxu1 }
  0xf7   :  { %v266_v33 = vmax.f32 %v818_v60, 0.0 }
  0xf8   :  { %v1282_v6 = vpop.f32.mrf.mxu0  ;;  %v1284_v7 = vpop.f32.mrf.mxu1 }
  0xf9   :  { %v821_v29 = vadd.f32 %v1282_v6, %v1278_v4 }
  0xfa   :  { %v1286_v8 = vpop.f32.mrf.mxu0  ;;  %v1288_v9 = vpop.f32.mrf.mxu1 }
  0xfc   :  { %v1290_v10 = vpop.f32.mrf.mxu0  ;;  %v1292_v11 = vpop.f32.mrf.mxu1 }
  0xfe   :  { %v1294_v12 = vpop.f32.mrf.mxu0  ;;  %v1296_v13 = vpop.f32.mrf.mxu1 }
 0x100   :  { %v1298_v14 = vpop.f32.mrf.mxu0  ;;  %v1300_v15 = vpop.f32.mrf.mxu1 }
 0x102   :  { %v884_v16 = vpop.f32.mrf.mxu0  ;;  %v924_v17 = vpop.f32.mrf.mxu1 }
 0x104   :  { %v885_v22 = vpop.f32.mrf.mxu0  ;;  %v925_v23 = vpop.f32.mrf.mxu1 }
 0x105   :  { %v886_v24 = vadd.f32 %v885_v22, %v884_v16  ;;  %v926_v25 = vadd.f32 %v925_v23, %v924_v17  ;;  %v265_v22 = vmax.f32 %v815_v47, 0.0 }
 0x106   :  { %v887_v26 = vpop.f32.mrf.mxu0  ;;  %v927_v27 = vpop.f32.mrf.mxu1 }
 0x107   :  { %v512_v30 = vmax.f32 %v886_v24, 0.0  ;;  %v633_v31 = vmax.f32 %v926_v25, 0.0 }
 0x108   :  { %v888_v34 = vpop.f32.mrf.mxu0  ;;  %v928_v35 = vpop.f32.mrf.mxu1 }
 0x109   :  { %v889_v36 = vadd.f32 %v888_v34, %v887_v26  ;;  %v929_v37 = vadd.f32 %v928_v35, %v927_v27  ;;  %v641_v41 = vmax.f32 %v512_v30, %v633_v31  ;;  %v861_v30 = vadd.f32 %v1284_v7, %v1280_v5 }
 0x10a   :  { %v890_v38 = vpop.f32.mrf.mxu0  ;;  %v930_v39 = vpop.f32.mrf.mxu1  ;;  %v394_v31 = vmax.f32 %v265_v22, %v386_v56  ;;  %v387_v34 = vmax.f32 %v858_v61, 0.0 }
 0x10b   :  { %v513_v42 = vmax.f32 %v889_v36, 0.0  ;;  %v634_v43 = vmax.f32 %v929_v37, 0.0  ;;  %v649_v16 = vmax.f32 %v391_v40, %v641_v41  ;;  %v267_v41 = vmax.f32 %v821_v29, 0.0 }
 0x10c   :  { %v891_v48 = vpop.f32.mrf.mxu0  ;;  %v931_v49 = vpop.f32.mrf.mxu1  ;;  %v395_v46 = vmax.f32 %v266_v33, %v387_v34 }
 0x10d   :  { %v642_v51 = vmax.f32 %v513_v42, %v634_v43  ;;  %v892_v52 = vadd.f32 %v891_v48, %v890_v38  ;;  %v932_v53 = vadd.f32 %v931_v49, %v930_v39  ;;  %v388_v42 = vmax.f32 %v861_v30, 0.0 }
 0x10e   :  { %v893_v54 = vpop.f32.mrf.mxu0  ;;  %v933_v55 = vpop.f32.mrf.mxu1 }
 0x10f   :  { %v650_v17 = vmax.f32 %v392_v44, %v642_v51  ;;  %v514_v18 = vmax.f32 %v892_v52, 0.0  ;;  %v635_v19 = vmax.f32 %v932_v53, 0.0  ;;  %v396_v50 = vmax.f32 %v267_v41, %v388_v42 }
 0x110   :  { %v894_v23 = vpop.f32.mrf.mxu0  ;;  %v934_v24 = vpop.f32.mrf.mxu1  ;;  %v824_v51 = vadd.f32 %v1290_v10, %v1286_v8  ;;  %v864_v52 = vadd.f32 %v1292_v11, %v1288_v9  ;;  %v827_v53 = vadd.f32 %v1298_v14, %v1294_v12 }
 0x111   :  { %v768_v57 = vpack.c.bf16 %v650_v17, %v649_v16  ;;  %v895_v58 = vadd.f32 %v894_v23, %v893_v54  ;;  %v935_v59 = vadd.f32 %v934_v24, %v933_v55  ;;  %v643_v25 = vmax.f32 %v514_v18, %v635_v19 }
 0x112   :  { %v896_v62 = vpop.f32.mrf.mxu0  ;;  %v936_v63 = vpop.f32.mrf.mxu1  ;;  %v867_v16 = vadd.f32 %v1300_v15, %v1296_v13  ;;  %v268_v10 = vmax.f32 %v824_v51, 0.0  ;;  %v389_v56 = vmax.f32 %v864_v52, 0.0  ;;  %v269_v9 = vmax.f32 %v827_v53, 0.0 }
 0x113   :  { %769 = vst [vmem:[%s1335_s5] sm:$0xff] %v768_v57   ;;  %v515_v26 = vmax.f32 %v895_v58, 0.0  ;;  %v636_v27 = vmax.f32 %v935_v59, 0.0  ;;  %v651_v37 = vmax.f32 %v393_v28, %v643_v25 }
 0x114   :  { %v897_v0 = vpop.f32.mrf.mxu0  ;;  %v937_v2 = vpop.f32.mrf.mxu1  ;;  %v390_v12 = vmax.f32 %v867_v16, 0.0  ;;  %v397_v61 = vmax.f32 %v268_v10, %v389_v56 }
 0x115   :  { %v644_v1 = vmax.f32 %v515_v26, %v636_v27  ;;  %v898_v3 = vadd.f32 %v897_v0, %v896_v62  ;;  %v938_v32 = vadd.f32 %v937_v2, %v936_v63 }
 0x116   :  { %v899_v35 = vpop.f32.mrf.mxu0  ;;  %v939_v36 = vpop.f32.mrf.mxu1  ;;  %v398_v62 = vmax.f32 %v269_v9, %v390_v12 }
 0x117   :  { %v652_v38 = vmax.f32 %v394_v31, %v644_v1  ;;  %v516_v39 = vmax.f32 %v898_v3, 0.0  ;;  %v637_v40 = vmax.f32 %v938_v32, 0.0 }
 0x118   :  { %v900_v4 = vpop.f32.mrf.mxu0  ;;  %v940_v6 = vpop.f32.mrf.mxu1 }
 0x119   :  { %v773_v43 = vpack.c.bf16 %v652_v38, %v651_v37  ;;  %v901_v5 = vadd.f32 %v900_v4, %v899_v35  ;;  %v941_v7 = vadd.f32 %v940_v6, %v939_v36  ;;  %v645_v47 = vmax.f32 %v516_v39, %v637_v40 }
 0x11a   :  { %v902_v44 = vpop.f32.mrf.mxu0  ;;  %v942_v45 = vpop.f32.mrf.mxu1 }
 0x11b   :  { %785 = vst [vmem:[%s1335_s5 + $0x8] sm:$0xff] %v773_v43   ;;  %v517_v48 = vmax.f32 %v901_v5, 0.0  ;;  %v638_v49 = vmax.f32 %v941_v7, 0.0  ;;  %v653_v22 = vmax.f32 %v395_v46, %v645_v47 }
 0x11c   :  { %v903_v54 = vpop.f32.mrf.mxu0  ;;  %v943_v55 = vpop.f32.mrf.mxu1 }
 0x11d   :  { %v646_v17 = vmax.f32 %v517_v48, %v638_v49  ;;  %v904_v18 = vadd.f32 %v903_v54, %v902_v44  ;;  %v944_v19 = vadd.f32 %v943_v55, %v942_v45 }
 0x11e   :  { %v905_v20 = vpop.f32.mrf.mxu0  ;;  %v945_v21 = vpop.f32.mrf.mxu1 }
 0x11f   :  { %v654_v23 = vmax.f32 %v396_v50, %v646_v17  ;;  %v518_v24 = vmax.f32 %v904_v18, 0.0  ;;  %v639_v8 = vmax.f32 %v944_v19, 0.0 }
 0x120   :  { %v906_v11 = vpop.f32.mrf.mxu0  ;;  %v946_v57 = vpop.f32.mrf.mxu1 }
 0x121   :  { %v778_v14 = vpack.c.bf16 %v654_v23, %v653_v22  ;;  %v907_v58 = vadd.f32 %v906_v11, %v905_v20  ;;  %v947_v59 = vadd.f32 %v946_v57, %v945_v21  ;;  %v647_v13 = vmax.f32 %v518_v24, %v639_v8 }
 0x123   :  { %786 = vst [vmem:[%s1335_s5 + $0x10] sm:$0xff] %v778_v14   ;;  %v519_v15 = vmax.f32 %v907_v58, 0.0  ;;  %v640_v60 = vmax.f32 %v947_v59, 0.0  ;;  %v655_v25 = vmax.f32 %v397_v61, %v647_v13 }
 0x125   :  { %v648_v63 = vmax.f32 %v519_v15, %v640_v60 }
 0x127   :  { %v656_v26 = vmax.f32 %v398_v62, %v648_v63 }
 0x129   :  { %v783_v27 = vpack.c.bf16 %v656_v26, %v655_v25 }
 0x12b   :  { %787 = vst [vmem:[%s1335_s5 + $0x18] sm:$0xff] %v783_v27  }

// kernel: _lambda_.5
= control target key start
LH: loop header
LB: loop body
LE: loop exit
PB: predicated region body
PF: predicated region fallthrough
CT: control target
= control target key end

     0   :  { %v812_v34 = vmov 0.0   ;;  %vm813_vm0 = vmmov 0   ;;  %s1019_s1 = inlined_call_operand.vmem [shape: bf16[512,128], index: 1, kind: input, shape index: {}]   ;;  %s1020_s0 = inlined_call_operand.vmem [shape: bf16[16,512], index: 0, kind: input, shape index: {}]   ;;  %s1021_s2 = inlined_call_operand.vmem [shape: bf16[128,128], index: 2, kind: input, shape index: {}]   ;;  %s1022_s3 = inlined_call_operand.vmem [shape: bf16[128,128], index: 3, kind: input, shape index: {}]   ;;  %s1023_s4 = inlined_call_operand.vmem [shape: f32[16,128], index: 4, kind: output, shape index: {}]  }
   0x1   :  { %v758_v0 = vld [vmem:[%s1019_s1 + $0x78] sm:$0xff]   ;;  %v762_v4 = vld [vmem:[%s1019_s1 + $0x70] sm:$0xff]   ;;  %v766_v8 = vld [vmem:[%s1019_s1 + $0x68] sm:$0xff]  }
   0x2   :  { %v759_v1 = vld [vmem:[%s1019_s1 + $0xf8] sm:$0xff]   ;;  %654 = vmatprep.subr.bf16.mxu0 %v758_v0  ;;  %v763_v5 = vld [vmem:[%s1019_s1 + $0xf0] sm:$0xff]   ;;  %v767_v9 = vld [vmem:[%s1019_s1 + $0xe8] sm:$0xff]  }
   0x3   :  { %v760_v2 = vld [vmem:[%s1019_s1 + $0x38] sm:$0xff]   ;;  %676 = vmatprep.subr.bf16.mxu1 %v759_v1  ;;  %v764_v6 = vld [vmem:[%s1019_s1 + $0x30] sm:$0xff]   ;;  %v768_v10 = vld [vmem:[%s1019_s1 + $0x28] sm:$0xff]  }
   0x4   :  { %v761_v3 = vld [vmem:[%s1019_s1 + $0xb8] sm:$0xff]   ;;  %655 = vmatpush3.bf16.msra.mxu0 %v760_v2  ;;  %v765_v7 = vld [vmem:[%s1019_s1 + $0xb0] sm:$0xff]   ;;  %v769_v11 = vld [vmem:[%s1019_s1 + $0xa8] sm:$0xff]  }
   0x5   :  { %677 = vmatpush3.bf16.msra.mxu1 %v761_v3  ;;  %656 = vmatprep.subr.bf16.mxu0 %v762_v4  ;;  %v770_v12 = vld [vmem:[%s1019_s1 + $0x60] sm:$0xff]   ;;  %v774_v16 = vld [vmem:[%s1019_s1 + $0x58] sm:$0xff]   ;;  %v778_v20 = vld [vmem:[%s1019_s1 + $0x50] sm:$0xff]  }
   0x6   :  { %678 = vmatprep.subr.bf16.mxu1 %v763_v5  ;;  %v771_v13 = vld [vmem:[%s1019_s1 + $0xe0] sm:$0xff]   ;;  %v775_v17 = vld [vmem:[%s1019_s1 + $0xd8] sm:$0xff]   ;;  %v779_v21 = vld [vmem:[%s1019_s1 + $0xd0] sm:$0xff]  }
   0x7   :  { %v772_v14 = vld [vmem:[%s1019_s1 + $0x20] sm:$0xff]   ;;  %v776_v18 = vld [vmem:[%s1019_s1 + $0x18] sm:$0xff]   ;;  %v780_v22 = vld [vmem:[%s1019_s1 + $0x10] sm:$0xff]  }
   0x8   :  { %657 = vmatpush3.bf16.msra.mxu0 %v764_v6  ;;  %v773_v15 = vld [vmem:[%s1019_s1 + $0xa0] sm:$0xff]   ;;  %v777_v19 = vld [vmem:[%s1019_s1 + $0x98] sm:$0xff]   ;;  %v781_v23 = vld [vmem:[%s1019_s1 + $0x90] sm:$0xff]  }
   0x9   :  { %679 = vmatpush3.bf16.msra.mxu1 %v765_v7  ;;  %658 = vmatprep.subr.bf16.mxu0 %v766_v8  ;;  %v782_v24 = vld [vmem:[%s1019_s1 + $0x48] sm:$0xff]   ;;  %v786_v28 = vld [vmem:[%s1019_s1 + $0x40] sm:$0xff]   ;;  %v796_v37 = vld [vmem:[%s1021_s2 + $0x38] sm:$0xff]  }
   0xa   :  { %680 = vmatprep.subr.bf16.mxu1 %v767_v9  ;;  %v783_v25 = vld [vmem:[%s1019_s1 + $0xc8] sm:$0xff]   ;;  %v787_v29 = vld [vmem:[%s1019_s1 + $0xc0] sm:$0xff]   ;;  %v797_v38 = vld [vmem:[%s1021_s2 + $0x30] sm:$0xff]  }
   0xb   :  { %v784_v26 = vld [vmem:[%s1019_s1 + $0x8] sm:$0xff]   ;;  %v788_v30 = vld [vmem:[%s1019_s1] sm:$0xff]   ;;  %v800_v41 = vld [vmem:[%s1021_s2 + $0x18] sm:$0xff]  }
   0xc   :  { %659 = vmatpush3.bf16.msra.mxu0 %v768_v10  ;;  %v785_v27 = vld [vmem:[%s1019_s1 + $0x88] sm:$0xff]   ;;  %v789_v31 = vld [vmem:[%s1019_s1 + $0x80] sm:$0xff]   ;;  %v801_v42 = vld [vmem:[%s1021_s2 + $0x10] sm:$0xff]  }
   0xd   :  { %681 = vmatpush3.bf16.msra.mxu1 %v769_v11  ;;  %660 = vmatprep.subr.bf16.mxu0 %v770_v12  ;;  %v790_v32 = vld [vmem:[%s1020_s0] ss:$16 sps:$4 sm:$0xff]   ;;  %v792_v33 = vld [vmem:[%s1020_s0 + $0x4] ss:$16 sps:$4 sm:$0xff]   ;;  %v793_v35 = vld [vmem:[%s1020_s0 + $0x8] ss:$16 sps:$4 sm:$0xff]  }
   0xe   :  { %682 = vmatprep.subr.bf16.mxu1 %v771_v13  ;;  %v795_v36 = vld [vmem:[%s1020_s0 + $0xc] ss:$16 sps:$4 sm:$0xff]   ;;  %330 = vmatprep.mubr.bf16.mxu0 %v792_v33  ;;  %v799_v40 = vld [vmem:[%s1021_s2 + $0x20] sm:$0xff]   ;;  %v805_v46 = vld [vmem:[%s1022_s3 + $0x30] sm:$0xff]  }
   0xf   :  { %371 = vmatprep.mubr.bf16.mxu1 %v795_v36  ;;  %v798_v39 = vld [vmem:[%s1021_s2 + $0x28] sm:$0xff]   ;;  %v803_v44 = vld [vmem:[%s1021_s2] sm:$0xff]   ;;  %v804_v45 = vld [vmem:[%s1022_s3 + $0x38] sm:$0xff]  }
  0x10   :  { %661 = vmatpush3.bf16.msra.mxu0 %v772_v14  ;;  %v802_v43 = vld [vmem:[%s1021_s2 + $0x8] sm:$0xff]   ;;  %v807_v48 = vld [vmem:[%s1022_s3 + $0x20] sm:$0xff]   ;;  %v808_v49 = vld [vmem:[%s1022_s3 + $0x18] sm:$0xff]  }
  0x11   :  { %683 = vmatpush3.bf16.msra.mxu1 %v773_v15  ;;  %662 = vmatprep.subr.bf16.mxu0 %v774_v16  ;;  %v806_v47 = vld [vmem:[%s1022_s3 + $0x28] sm:$0xff]   ;;  %v809_v50 = vld [vmem:[%s1022_s3 + $0x10] sm:$0xff]   ;;  %v811_v5 = vld [vmem:[%s1022_s3] sm:$0xff]  }
  0x12   :  { %684 = vmatprep.subr.bf16.mxu1 %v775_v17  ;;  %v810_v4 = vld [vmem:[%s1022_s3 + $0x8] sm:$0xff]  }
  0x14   :  { %663 = vmatpush3.bf16.msra.mxu0 %v776_v18 }
  0x15   :  { %685 = vmatpush3.bf16.msra.mxu1 %v777_v19  ;;  %664 = vmatprep.subr.bf16.mxu0 %v778_v20 }
  0x16   :  { %686 = vmatprep.subr.bf16.mxu1 %v779_v21 }
  0x18   :  { %665 = vmatpush3.bf16.msra.mxu0 %v780_v22 }
  0x19   :  { %687 = vmatpush3.bf16.msra.mxu1 %v781_v23  ;;  %666 = vmatprep.subr.bf16.mxu0 %v782_v24 }
  0x1a   :  { %688 = vmatprep.subr.bf16.mxu1 %v783_v25 }
  0x1c   :  { %667 = vmatpush3.bf16.msra.mxu0 %v784_v26 }
  0x1d   :  { %689 = vmatpush3.bf16.msra.mxu1 %v785_v27  ;;  %668 = vmatprep.subr.bf16.mxu0 %v786_v28 }
  0x1e   :  { %690 = vmatprep.subr.bf16.mxu1 %v787_v29 }
  0x20   :  { %669 = vmatpush3.bf16.msra.mxu0 %v788_v30 }
  0x21   :  { %691 = vmatpush3.bf16.msra.mxu1 %v789_v31  ;;  %716 = vmatprep.subr.bf16.mxu0 %v812_v34 }
  0x22   :  { %736 = vmatprep.subr.bf16.mxu1 %v812_v34 }
  0x23   :  { %331 = vmatmul.mubr.bf16.vlgmr.msra.gmra.mxu0 %v790_v32 }
  0x24   :  { %372 = vmatmul.mubr.bf16.vlgmr.msra.gmra.mxu1 %v793_v35  ;;  %717 = vmatpush3.bf16.msra.mxu0 %v796_v37 }
  0x25   :  { %718 = vmatprep.subr.bf16.mxu0 %v812_v34  ;;  %732 = vmatprep.mubr.msk.bf16.mxu0 %vm813_vm0, %v812_v34 }
  0x26   :  { %752 = vmatprep.mubr.msk.bf16.mxu1 %vm813_vm0, %v812_v34  ;;  %737 = vmatpush3.bf16.msra.mxu1 %v804_v45 }
  0x27   :  { %738 = vmatprep.subr.bf16.mxu1 %v812_v34 }
  0x28   :  { %719 = vmatpush3.bf16.msra.mxu0 %v797_v38 }
  0x29   :  { %720 = vmatprep.subr.bf16.mxu0 %v812_v34 }
  0x2a   :  { %739 = vmatpush3.bf16.msra.mxu1 %v805_v46 }
  0x2b   :  { %740 = vmatprep.subr.bf16.mxu1 %v812_v34 }
  0x2c   :  { %721 = vmatpush3.bf16.msra.mxu0 %v798_v39 }
  0x2d   :  { %722 = vmatprep.subr.bf16.mxu0 %v812_v34 }
  0x2e   :  { %741 = vmatpush3.bf16.msra.mxu1 %v806_v47 }
  0x2f   :  { %742 = vmatprep.subr.bf16.mxu1 %v812_v34 }
  0x30   :  { %723 = vmatpush3.bf16.msra.mxu0 %v799_v40 }
  0x31   :  { %724 = vmatprep.subr.bf16.mxu0 %v812_v34 }
  0x32   :  { %743 = vmatpush3.bf16.msra.mxu1 %v807_v48 }
  0x33   :  { %744 = vmatprep.subr.bf16.mxu1 %v812_v34 }
  0x34   :  { %725 = vmatpush3.bf16.msra.mxu0 %v800_v41 }
  0x35   :  { %726 = vmatprep.subr.bf16.mxu0 %v812_v34 }
  0x36   :  { %745 = vmatpush3.bf16.msra.mxu1 %v808_v49 }
  0x37   :  { %746 = vmatprep.subr.bf16.mxu1 %v812_v34 }
  0x38   :  { %727 = vmatpush3.bf16.msra.mxu0 %v801_v42 }
  0x39   :  { %728 = vmatprep.subr.bf16.mxu0 %v812_v34 }
  0x3a   :  { %747 = vmatpush3.bf16.msra.mxu1 %v809_v50 }
  0x3b   :  { %748 = vmatprep.subr.bf16.mxu1 %v812_v34 }
  0x3c   :  { %729 = vmatpush3.bf16.msra.mxu0 %v802_v43 }
  0x3d   :  { %730 = vmatprep.subr.bf16.mxu0 %v812_v34 }
  0x3e   :  { %749 = vmatpush3.bf16.msra.mxu1 %v810_v4 }
  0x3f   :  { %750 = vmatprep.subr.bf16.mxu1 %v812_v34 }
  0x40   :  { %731 = vmatpush3.bf16.msra.mxu0 %v803_v44 }
  0x42   :  { %751 = vmatpush3.bf16.msra.mxu1 %v811_v5 }
  0xe3   :  { %v670_v51 = vpop.f32.mrf.mxu0 }
  0xe4   :  { %v692_v52 = vpop.f32.mrf.mxu1 }
  0xe5   :  { %v671_v53 = vpop.f32.mrf.mxu0 }
  0xe6   :  { %v693_v54 = vpop.f32.mrf.mxu1  ;;  %v672_v55 = vadd.f32 %v671_v53, %v670_v51 }
  0xe7   :  { %v694_v56 = vadd.f32 %v693_v54, %v692_v52  ;;  %v673_v57 = vpop.f32.mrf.mxu0 }
  0xe8   :  { %v695_v58 = vpop.f32.mrf.mxu1 }
  0xe9   :  { %v674_v59 = vpop.f32.mrf.mxu0  ;;  %v374_v62 = vadd.f32 %v694_v56, %v672_v55 }
  0xea   :  { %v675_v60 = vadd.f32 %v674_v59, %v673_v57  ;;  %v696_v61 = vpop.f32.mrf.mxu1 }
  0xeb   :  { %v697_v63 = vadd.f32 %v696_v61, %v695_v58  ;;  %v380_v1 = vmax.f32 %v374_v62, 0.0 }
  0xed   :  { %v377_v0 = vadd.f32 %v697_v63, %v675_v60 }
  0xef   :  { %v381_v2 = vmax.f32 %v377_v0, 0.0 }
  0xf1   :  { %v382_v3 = vpack.c.bf16 %v381_v2, %v380_v1 }
  0xf3   :  { %733 = vmatmul.mubr.bf16.vlgmr.msra.gmra.mxu0 %v382_v3 }
 0x1b3   :  { %v481_v6 = vpop.f32.mrf.mxu0 }
 0x1b4   :  { %v488_v9 = vmax.f32 %v481_v6, 0.0 }
 0x1b5   :  { %v734_v7 = vpop.f32.mrf.mxu0 }
 0x1b7   :  { %v484_v8 = vpop.f32.mrf.mxu0 }
 0x1b8   :  { %v489_v10 = vmax.f32 %v484_v8, 0.0 }
 0x1b9   :  { %v735_v11 = vpop.f32.mrf.mxu0 }
 0x1ba   :  { %v490_v12 = vpack.c.bf16 %v489_v10, %v488_v9 }
 0x1bc   :  { %753 = vmatmul.mubr.bf16.vlgmr.msra.gmra.mxu1 %v490_v12 }
 0x27c   :  { %v589_v13 = vpop.f32.mrf.mxu1 }
 0x27d   :  { %596 = vst [vmem:[%s1023_s4] sm:$0xff] %v589_v13 }
 0x27e   :  { %v754_v14 = vpop.f32.mrf.mxu1 }
 0x280   :  { %v592_v15 = vpop.f32.mrf.mxu1 }
 0x281   :  { %597 = vst [vmem:[%s1023_s4 + $0x8] sm:$0xff] %v592_v15 }
 0x282   :  { %v755_v16 = vpop.f32.mrf.mxu1 }

</bundles_post_ra>
